<compile_context>
chip_gen: v6e
topology: v6e:2x2x1
jax: 0.10.0
libtpu: 0.0.40
codegen_flags: <defaults>
</compile_context>

<pallas_src>
import jax
import jax.numpy as jnp
from jax.experimental import pallas as pl
from jax.experimental.pallas import tpu as pltpu

B = 8          # batch_size
H = 128        # hidden_size
NC = 8         # num classes per task (stand-in for get_num_classes)
TASKS = 3      # number of task labels in type_of_label
OUT_PAD = 128  # lane-dense padded logits width (NC padded to a full 128-lane tile)

_VMEM = pl.BlockSpec(memory_space=pltpu.MemorySpace.VMEM)


def _make_graph(num_tasks):
    # generate_graph stand-in: task a feeds task b iff a < b (deterministic DAG).
    # Rows/cols 0 are never consulted because the forward loops run over 1..TASKS.
    return [[a < b for b in range(num_tasks + 1)] for a in range(num_tasks + 1)]


def _static_plan():
    """Simulate the (fully static) control flow of the forward pass once, recording which
    hs_fc/cs_fc pairs and which article_fc layers are actually reached.  Pack time and the
    kernel body both follow exactly this plan, so only these weights are shipped to VMEM."""
    graph = _make_graph(TASKS)
    first = [True] * (TASKS + 1)
    hs_pairs = []   # (a, b) pairs whose hs_fc/cs_fc linears are evaluated
    art_idx = []    # b indices whose article_fc linears are evaluated
    for a in range(1, TASKS + 1):
        for b in range(1, TASKS + 1):
            if graph[a][b]:
                if first[b]:
                    first[b] = False
                else:
                    hs_pairs.append((a, b))
        if a == 1:
            for b in range(a + 1, TASKS + 1):
                if first[b]:
                    first[b] = False
                else:
                    art_idx.append(b)
    return hs_pairs, art_idx


_HS_PAIRS, _ART_IDX = _static_plan()
_HS_SLOT = {p: i for i, p in enumerate(_HS_PAIRS)}
_ART_SLOT = {b: i for i, b in enumerate(_ART_IDX)}


# ------------------------------ fused Pallas kernel ------------------------------

def _bifeedback_kernel(x_ref,
                       wih_ref,                       # (H, TASKS*4H)   all-tasks input proj
                       whh_ref, bg_ref,               # (T,H,4H) (T,1,4H)
                       wm_ref, bm_ref,                # (T,H,H)  (T,1,H)
                       wo_ref, bo_ref,                # (T,H,OUT_PAD) (T,1,OUT_PAD) zero-padded
                       hsw_ref, hsb_ref,              # (Nhs,H,H) (Nhs,1,H)   pruned hs_fc
                       csw_ref, csb_ref,              # (Nhs,H,H) (Nhs,1,H)   pruned cs_fc
                       aw_ref, ab_ref,                # (Na,H,H)  (Na,1,H)    pruned article_fc
                       aew_ref, aeb_ref,              # (OUT_PAD,H) (1,H)     zero-padded
                       out_ref):                      # (T, B, OUT_PAD)
    x = x_ref[...]
    graph = _make_graph(TASKS)

    # One MXU matmul covering x @ W_ih for all tasks (x is shared across tasks).
    x_gates = jnp.dot(x, wih_ref[...], preferred_element_type=jnp.float32)  # (B, TASKS*4H)

    zeros = jnp.zeros((B, H), jnp.float32)
    hidden = [(zeros, zeros) for _ in range(TASKS + 1)]   # h/c states stay on-chip
    is_zero = [True] * (TASKS + 1)                        # static zero-state tracking
    first = [True] * (TASKS + 1)

    for a in range(1, TASKS + 1):          # static unroll
        idx = a - 1
        h_prev, c_prev = hidden[a]

        # LSTMCell: gates = x@Wih^T + h@Whh^T + (b_ih + b_hh); gate order i, f, g, o
        gates = x_gates[:, idx * 4 * H:(idx + 1) * 4 * H] + bg_ref[idx]
        if not is_zero[a]:
            gates = gates + jnp.dot(h_prev, whh_ref[idx],
                                    preferred_element_type=jnp.float32)
        sig_if = jax.nn.sigmoid(gates[:, 0:2 * H])     # i,f activated on one contiguous block
        i_g = sig_if[:, 0:H]
        f_g = sig_if[:, H:2 * H]
        g_g = jnp.tanh(gates[:, 2 * H:3 * H])
        o_g = jax.nn.sigmoid(gates[:, 3 * H:4 * H])
        c = i_g * g_g if is_zero[a] else f_g * c_prev + i_g * g_g
        h = o_g * jnp.tanh(c)

        # graph feedback: hp/cp updates, all dots in the same kernel body
        for b in range(1, TASKS + 1):
            if graph[a][b]:
                hp, cp = hidden[b]
                if first[b]:
                    first[b] = False
                    hp, cp = h, c
                else:
                    s = _HS_SLOT[(a, b)]
                    hp = hp + jnp.dot(h, hsw_ref[s],
                                      preferred_element_type=jnp.float32) + hsb_ref[s]
                    cp = cp + jnp.dot(c, csw_ref[s],
                                      preferred_element_type=jnp.float32) + csb_ref[s]
                hidden[b] = (hp, cp)
                is_zero[b] = False

        # config: attention = False (skip), more_fc = True (midfc -> relu -> outfc)
        mid = jnp.maximum(
            jnp.dot(h, wm_ref[idx], preferred_element_type=jnp.float32) + bm_ref[idx], 0.0)
        out_a = (jnp.dot(mid, wo_ref[idx], preferred_element_type=jnp.float32)
                 + bo_ref[idx])                       # (B, OUT_PAD); lanes >= NC are zero
        out_ref[idx] = out_a                          # full 128-lane (unmasked) store

        if a == 1:
            # ArticleEncoder stand-in: tanh(Linear(num_classes -> hidden)) of outputs[0].
            # aew rows >= NC are zero, so the padded lanes of out_a contribute nothing.
            article_embedding = jnp.tanh(
                jnp.dot(out_a, aew_ref[...], preferred_element_type=jnp.float32)
                + aeb_ref[...])
            for b in range(a + 1, TASKS + 1):
                hp, cp = hidden[b]
                if first[b]:
                    first[b] = False
                    hp, cp = article_embedding, c
                else:
                    s = _ART_SLOT[b]
                    hp = hp + jnp.dot(article_embedding, aw_ref[s],
                                      preferred_element_type=jnp.float32) + ab_ref[s]
                hidden[b] = (hp, cp)
                is_zero[b] = False


# ------------------------------- parameter handling -------------------------------

def _init_linear(key, out_f, in_f, scale=0.1):
    kw, kb = jax.random.split(key)
    w = scale * jax.random.normal(kw, (out_f, in_f), jnp.float32)   # PyTorch [out, in]
    b = scale * jax.random.normal(kb, (out_f,), jnp.float32)
    return w, b


def init_params(key):
    keys = iter(jax.random.split(key, 64))
    params = {}
    params['outfc'] = [_init_linear(next(keys), NC, H) for _ in range(TASKS)]
    params['midfc'] = [_init_linear(next(keys), H, H) for _ in range(TASKS)]
    lstm = []
    for _ in range(TASKS):
        w_ih, b_ih = _init_linear(next(keys), 4 * H, H)
        w_hh, b_hh = _init_linear(next(keys), 4 * H, H)
        lstm.append((w_ih, w_hh, b_ih + b_hh))
    params['lstm'] = lstm
    params['hs_fc'] = [[_init_linear(next(keys), H, H) for _ in range(TASKS + 1)]
                       for _ in range(TASKS + 1)]
    params['cs_fc'] = [[_init_linear(next(keys), H, H) for _ in range(TASKS + 1)]
                       for _ in range(TASKS + 1)]
    params['article_fc'] = [_init_linear(next(keys), H, H) for _ in range(TASKS + 1)]
    params['article_enc'] = _init_linear(next(keys), H, NC)
    return params


def _stack_or_dummy(ws, bs):
    """Stack a (possibly empty) list of [in,out] weights / (1,out) biases; emit a 1-entry
    zero dummy when nothing is used so the pallas_call signature stays fixed."""
    if ws:
        return jnp.stack(ws), jnp.stack(bs)
    return jnp.zeros((1, H, H), jnp.float32), jnp.zeros((1, 1, H), jnp.float32)


def pack_params(params):
    """Pre-transpose weights to [in, out], pre-reshape biases to (1, out), zero-pad the
    NC-wide output head to a full 128-lane tile, fuse the per-task W_ih into one slab, and
    prune hs_fc/cs_fc/article_fc down to the layers the static forward plan reaches -- all ONCE."""
    wih_all = jnp.concatenate([w.T for (w, _, _) in params['lstm']], axis=1)  # (H, T*4H)
    whh = jnp.stack([w.T for (_, w, _) in params['lstm']])                    # (T, H, 4H)
    bg = jnp.stack([b.reshape(1, -1) for (_, _, b) in params['lstm']])        # (T, 1, 4H)
    wm = jnp.stack([w.T for (w, _) in params['midfc']])                       # (T, H, H)
    bm = jnp.stack([b.reshape(1, -1) for (_, b) in params['midfc']])          # (T, 1, H)
    # outfc: pad NC -> OUT_PAD output columns with zeros (lane-dense logits slab).
    wo = jnp.stack([jnp.pad(w.T, ((0, 0), (0, OUT_PAD - NC)))
                    for (w, _) in params['outfc']])                           # (T, H, 128)
    bo = jnp.stack([jnp.pad(b.reshape(1, -1), ((0, 0), (0, OUT_PAD - NC)))
                    for (_, b) in params['outfc']])                           # (T, 1, 128)
    # Only the hs/cs/article layers reached by the static plan are shipped.
    hsw, hsb = _stack_or_dummy(
        [params['hs_fc'][a][b][0].T for (a, b) in _HS_PAIRS],
        [params['hs_fc'][a][b][1].reshape(1, -1) for (a, b) in _HS_PAIRS])
    csw, csb = _stack_or_dummy(
        [params['cs_fc'][a][b][0].T for (a, b) in _HS_PAIRS],
        [params['cs_fc'][a][b][1].reshape(1, -1) for (a, b) in _HS_PAIRS])
    aw, ab = _stack_or_dummy(
        [params['article_fc'][b][0].T for b in _ART_IDX],
        [params['article_fc'][b][1].reshape(1, -1) for b in _ART_IDX])
    # article_enc: Linear(NC -> H); pad the (NC, H) transposed weight to (OUT_PAD, H) with zeros.
    aew = jnp.pad(params['article_enc'][0].T, ((0, OUT_PAD - NC), (0, 0)))    # (128, H)
    aeb = params['article_enc'][1].reshape(1, -1)                             # (1, H)
    return (wih_all, whh, bg, wm, bm, wo, bo, hsw, hsb, csw, csb, aw, ab, aew, aeb)


# ------------------------------------ forward ------------------------------------

def _fused_call(x, packed):
    n_in = 1 + len(packed)
    return pl.pallas_call(
        _bifeedback_kernel,
        out_shape=jax.ShapeDtypeStruct((TASKS, B, OUT_PAD), jnp.float32),
        in_specs=[_VMEM] * n_in,
        out_specs=_VMEM,
        compiler_params=pltpu.CompilerParams(vmem_limit_bytes=32 * 1024 * 1024),
    )(x, *packed)


@jax.jit
def bifeedback_forward(x, doc_len, packed):
    del doc_len  # TODO(synk): consumed only by the external ArticleEncoder in the reference
    slab = _fused_call(x, packed)                     # (TASKS, B, OUT_PAD)
    return [slab[a, :, :NC] for a in range(TASKS)]    # per-task (B, NC) logits


# ------------------------------------- main --------------------------------------

if __name__ == "__main__":
    key = jax.random.PRNGKey(0)
    kx, kp = jax.random.split(key)
    x = jax.random.normal(kx, (B, H), jnp.float32)          # [batch, hidden_size]
    doc_len = jnp.full((B,), 5, dtype=jnp.int32)
    params = init_params(kp)
    packed = pack_params(params)                            # one-time transpose/pad/prune/stack

    outs = bifeedback_forward(x, doc_len, packed)
    for o in outs:
        jax.block_until_ready(o)

    assert len(outs) == TASKS
    assert all(o.shape == (B, NC) and o.dtype == jnp.float32 for o in outs)
    print("KERNEL_OK")
</pallas_src>

<mosaic_0001>
module attributes {stable_mosaic.version = 11 : i64} {
  func.func @_bifeedback_kernel(%arg0: memref<8x128xf32, #tpu.memory_space<vmem>>, %arg1: memref<128x1536xf32, #tpu.memory_space<vmem>>, %arg2: memref<3x128x512xf32, #tpu.memory_space<vmem>>, %arg3: memref<3x1x512xf32, #tpu.memory_space<vmem>>, %arg4: memref<3x128x128xf32, #tpu.memory_space<vmem>>, %arg5: memref<3x1x128xf32, #tpu.memory_space<vmem>>, %arg6: memref<3x128x128xf32, #tpu.memory_space<vmem>>, %arg7: memref<3x1x128xf32, #tpu.memory_space<vmem>>, %arg8: memref<1x128x128xf32, #tpu.memory_space<vmem>>, %arg9: memref<1x1x128xf32, #tpu.memory_space<vmem>>, %arg10: memref<1x128x128xf32, #tpu.memory_space<vmem>>, %arg11: memref<1x1x128xf32, #tpu.memory_space<vmem>>, %arg12: memref<2x128x128xf32, #tpu.memory_space<vmem>>, %arg13: memref<2x1x128xf32, #tpu.memory_space<vmem>>, %arg14: memref<128x128xf32, #tpu.memory_space<vmem>>, %arg15: memref<1x128xf32, #tpu.memory_space<vmem>>, %arg16: memref<3x8x128xf32, #tpu.memory_space<vmem>>) attributes {dimension_semantics = [], scalar_prefetch = 0 : i64, scratch_operands = 0 : i64, tpu.core_type = #tpu.core_type<tc>} {
    %c0 = arith.constant 0 : index
    %c0_0 = arith.constant 0 : index
    %0 = vector.load %arg0[%c0, %c0_0] : memref<8x128xf32, #tpu.memory_space<vmem>>, vector<8x128xf32>
    %c0_1 = arith.constant 0 : index
    %c0_2 = arith.constant 0 : index
    %1 = vector.load %arg1[%c0_1, %c0_2] : memref<128x1536xf32, #tpu.memory_space<vmem>>, vector<128x1536xf32>
    %cst = arith.constant dense<0.000000e+00> : vector<8x1536xf32>
    %2 = tpu.matmul %0, %1, %cst {dimension_numbers = #tpu.dot_dimension_numbers<[1], [0], [0], [1], [0, 0, 1, 1], [], []>} : vector<8x128xf32>, vector<128x1536xf32>, vector<8x1536xf32> -> vector<8x1536xf32>
    %3 = vector.extract_strided_slice %2 {offsets = [0, 0], sizes = [8, 512], strides = [1, 1]} : vector<8x1536xf32> to vector<8x512xf32>
    %c0_3 = arith.constant 0 : index
    %c0_4 = arith.constant 0 : index
    %c0_5 = arith.constant 0 : index
    %4 = vector.load %arg3[%c0_3, %c0_4, %c0_5] : memref<3x1x512xf32, #tpu.memory_space<vmem>>, vector<1x1x512xf32>
    %5 = vector.shape_cast %4 : vector<1x1x512xf32> to vector<1x512xf32>
    %6 = vector.broadcast %5 : vector<1x512xf32> to vector<8x512xf32>
    %7 = arith.addf %3, %6 : vector<8x512xf32>
    %8 = vector.extract_strided_slice %7 {offsets = [0, 0], sizes = [8, 256], strides = [1, 1]} : vector<8x512xf32> to vector<8x256xf32>
    %9 = arith.negf %8 : vector<8x256xf32>
    %10 = math.exp %9 : vector<8x256xf32>
    %cst_6 = arith.constant 1.000000e+00 : f32
    %11 = vector.broadcast %cst_6 : f32 to vector<8x256xf32>
    %12 = arith.addf %11, %10 : vector<8x256xf32>
    %13 = arith.divf %11, %12 : vector<8x256xf32>
    %14 = vector.extract_strided_slice %13 {offsets = [0, 0], sizes = [8, 128], strides = [1, 1]} : vector<8x256xf32> to vector<8x128xf32>
    %15 = vector.extract_strided_slice %7 {offsets = [0, 256], sizes = [8, 128], strides = [1, 1]} : vector<8x512xf32> to vector<8x128xf32>
    %16 = math.tanh %15 : vector<8x128xf32>
    %17 = vector.extract_strided_slice %7 {offsets = [0, 384], sizes = [8, 128], strides = [1, 1]} : vector<8x512xf32> to vector<8x128xf32>
    %18 = arith.negf %17 : vector<8x128xf32>
    %19 = math.exp %18 : vector<8x128xf32>
    %cst_7 = arith.constant 1.000000e+00 : f32
    %20 = vector.broadcast %cst_7 : f32 to vector<8x128xf32>
    %21 = arith.addf %20, %19 : vector<8x128xf32>
    %22 = arith.divf %20, %21 : vector<8x128xf32>
    %23 = arith.mulf %14, %16 : vector<8x128xf32>
    %24 = math.tanh %23 : vector<8x128xf32>
    %25 = arith.mulf %22, %24 : vector<8x128xf32>
    %c0_8 = arith.constant 0 : index
    %c0_9 = arith.constant 0 : index
    %c0_10 = arith.constant 0 : index
    %26 = vector.load %arg4[%c0_8, %c0_9, %c0_10] : memref<3x128x128xf32, #tpu.memory_space<vmem>>, vector<1x128x128xf32>
    %27 = vector.shape_cast %26 : vector<1x128x128xf32> to vector<128x128xf32>
    %cst_11 = arith.constant dense<0.000000e+00> : vector<8x128xf32>
    %28 = tpu.matmul %25, %27, %cst_11 {dimension_numbers = #tpu.dot_dimension_numbers<[1], [0], [0], [1], [0, 0, 1, 1], [], []>} : vector<8x128xf32>, vector<128x128xf32>, vector<8x128xf32> -> vector<8x128xf32>
    %c0_12 = arith.constant 0 : index
    %c0_13 = arith.constant 0 : index
    %c0_14 = arith.constant 0 : index
    %29 = vector.load %arg5[%c0_12, %c0_13, %c0_14] : memref<3x1x128xf32, #tpu.memory_space<vmem>>, vector<1x1x128xf32>
    %30 = vector.shape_cast %29 : vector<1x1x128xf32> to vector<1x128xf32>
    %31 = vector.broadcast %30 : vector<1x128xf32> to vector<8x128xf32>
    %32 = arith.addf %28, %31 : vector<8x128xf32>
    %cst_15 = arith.constant 0.000000e+00 : f32
    %33 = vector.broadcast %cst_15 : f32 to vector<8x128xf32>
    %34 = arith.maximumf %32, %33 : vector<8x128xf32>
    %c0_16 = arith.constant 0 : index
    %c0_17 = arith.constant 0 : index
    %c0_18 = arith.constant 0 : index
    %35 = vector.load %arg6[%c0_16, %c0_17, %c0_18] : memref<3x128x128xf32, #tpu.memory_space<vmem>>, vector<1x128x128xf32>
    %36 = vector.shape_cast %35 : vector<1x128x128xf32> to vector<128x128xf32>
    %cst_19 = arith.constant dense<0.000000e+00> : vector<8x128xf32>
    %37 = tpu.matmul %34, %36, %cst_19 {dimension_numbers = #tpu.dot_dimension_numbers<[1], [0], [0], [1], [0, 0, 1, 1], [], []>} : vector<8x128xf32>, vector<128x128xf32>, vector<8x128xf32> -> vector<8x128xf32>
    %c0_20 = arith.constant 0 : index
    %c0_21 = arith.constant 0 : index
    %c0_22 = arith.constant 0 : index
    %38 = vector.load %arg7[%c0_20, %c0_21, %c0_22] : memref<3x1x128xf32, #tpu.memory_space<vmem>>, vector<1x1x128xf32>
    %39 = vector.shape_cast %38 : vector<1x1x128xf32> to vector<1x128xf32>
    %40 = vector.broadcast %39 : vector<1x128xf32> to vector<8x128xf32>
    %41 = arith.addf %37, %40 : vector<8x128xf32>
    %c0_23 = arith.constant 0 : index
    %c0_24 = arith.constant 0 : index
    %c0_25 = arith.constant 0 : index
    %42 = vector.load %arg16[%c0_23, %c0_24, %c0_25] : memref<3x8x128xf32, #tpu.memory_space<vmem>>, vector<1x8x128xf32>
    %43 = vector.shape_cast %42 : vector<1x8x128xf32> to vector<8x128xf32>
    %44 = vector.shape_cast %41 : vector<8x128xf32> to vector<1x8x128xf32>
    tpu.vector_store %arg16[%c0_23, %c0_24, %c0_25], %44 {strides = array<i32>} : memref<3x8x128xf32, #tpu.memory_space<vmem>>, vector<1x8x128xf32>,
    %c0_26 = arith.constant 0 : index
    %c0_27 = arith.constant 0 : index
    %45 = vector.load %arg14[%c0_26, %c0_27] : memref<128x128xf32, #tpu.memory_space<vmem>>, vector<128x128xf32>
    %cst_28 = arith.constant dense<0.000000e+00> : vector<8x128xf32>
    %46 = tpu.matmul %41, %45, %cst_28 {dimension_numbers = #tpu.dot_dimension_numbers<[1], [0], [0], [1], [0, 0, 1, 1], [], []>} : vector<8x128xf32>, vector<128x128xf32>, vector<8x128xf32> -> vector<8x128xf32>
    %c0_29 = arith.constant 0 : index
    %c0_30 = arith.constant 0 : index
    %47 = vector.load %arg15[%c0_29, %c0_30] : memref<1x128xf32, #tpu.memory_space<vmem>>, vector<1x128xf32>
    %48 = vector.broadcast %47 : vector<1x128xf32> to vector<8x128xf32>
    %49 = arith.addf %46, %48 : vector<8x128xf32>
    %50 = math.tanh %49 : vector<8x128xf32>
    %c0_31 = arith.constant 0 : index
    %c0_32 = arith.constant 0 : index
    %c0_33 = arith.constant 0 : index
    %51 = vector.load %arg12[%c0_31, %c0_32, %c0_33] : memref<2x128x128xf32, #tpu.memory_space<vmem>>, vector<1x128x128xf32>
    %52 = vector.shape_cast %51 : vector<1x128x128xf32> to vector<128x128xf32>
    %cst_34 = arith.constant dense<0.000000e+00> : vector<8x128xf32>
    %53 = tpu.matmul %50, %52, %cst_34 {dimension_numbers = #tpu.dot_dimension_numbers<[1], [0], [0], [1], [0, 0, 1, 1], [], []>} : vector<8x128xf32>, vector<128x128xf32>, vector<8x128xf32> -> vector<8x128xf32>
    %54 = arith.addf %25, %53 : vector<8x128xf32>
    %c0_35 = arith.constant 0 : index
    %c0_36 = arith.constant 0 : index
    %c0_37 = arith.constant 0 : index
    %55 = vector.load %arg13[%c0_35, %c0_36, %c0_37] : memref<2x1x128xf32, #tpu.memory_space<vmem>>, vector<1x1x128xf32>
    %56 = vector.shape_cast %55 : vector<1x1x128xf32> to vector<1x128xf32>
    %57 = vector.broadcast %56 : vector<1x128xf32> to vector<8x128xf32>
    %58 = arith.addf %54, %57 : vector<8x128xf32>
    %c1 = arith.constant 1 : index
    %c0_38 = arith.constant 0 : index
    %c0_39 = arith.constant 0 : index
    %59 = vector.load %arg12[%c1, %c0_38, %c0_39] : memref<2x128x128xf32, #tpu.memory_space<vmem>>, vector<1x128x128xf32>
    %60 = vector.shape_cast %59 : vector<1x128x128xf32> to vector<128x128xf32>
    %cst_40 = arith.constant dense<0.000000e+00> : vector<8x128xf32>
    %61 = tpu.matmul %50, %60, %cst_40 {dimension_numbers = #tpu.dot_dimension_numbers<[1], [0], [0], [1], [0, 0, 1, 1], [], []>} : vector<8x128xf32>, vector<128x128xf32>, vector<8x128xf32> -> vector<8x128xf32>
    %62 = arith.addf %25, %61 : vector<8x128xf32>
    %c1_41 = arith.constant 1 : index
    %c0_42 = arith.constant 0 : index
    %c0_43 = arith.constant 0 : index
    %63 = vector.load %arg13[%c1_41, %c0_42, %c0_43] : memref<2x1x128xf32, #tpu.memory_space<vmem>>, vector<1x1x128xf32>
    %64 = vector.shape_cast %63 : vector<1x1x128xf32> to vector<1x128xf32>
    %65 = vector.broadcast %64 : vector<1x128xf32> to vector<8x128xf32>
    %66 = arith.addf %62, %65 : vector<8x128xf32>
    %67 = vector.extract_strided_slice %2 {offsets = [0, 512], sizes = [8, 512], strides = [1, 1]} : vector<8x1536xf32> to vector<8x512xf32>
    %c1_44 = arith.constant 1 : index
    %c0_45 = arith.constant 0 : index
    %c0_46 = arith.constant 0 : index
    %68 = vector.load %arg3[%c1_44, %c0_45, %c0_46] : memref<3x1x512xf32, #tpu.memory_space<vmem>>, vector<1x1x512xf32>
    %69 = vector.shape_cast %68 : vector<1x1x512xf32> to vector<1x512xf32>
    %70 = vector.broadcast %69 : vector<1x512xf32> to vector<8x512xf32>
    %71 = arith.addf %67, %70 : vector<8x512xf32>
    %c1_47 = arith.constant 1 : index
    %c0_48 = arith.constant 0 : index
    %c0_49 = arith.constant 0 : index
    %72 = vector.load %arg2[%c1_47, %c0_48, %c0_49] : memref<3x128x512xf32, #tpu.memory_space<vmem>>, vector<1x128x512xf32>
    %73 = vector.shape_cast %72 : vector<1x128x512xf32> to vector<128x512xf32>
    %cst_50 = arith.constant dense<0.000000e+00> : vector<8x512xf32>
    %74 = tpu.matmul %58, %73, %cst_50 {dimension_numbers = #tpu.dot_dimension_numbers<[1], [0], [0], [1], [0, 0, 1, 1], [], []>} : vector<8x128xf32>, vector<128x512xf32>, vector<8x512xf32> -> vector<8x512xf32>
    %75 = arith.addf %71, %74 : vector<8x512xf32>
    %76 = vector.extract_strided_slice %75 {offsets = [0, 0], sizes = [8, 256], strides = [1, 1]} : vector<8x512xf32> to vector<8x256xf32>
    %77 = arith.negf %76 : vector<8x256xf32>
    %78 = math.exp %77 : vector<8x256xf32>
    %cst_51 = arith.constant 1.000000e+00 : f32
    %79 = vector.broadcast %cst_51 : f32 to vector<8x256xf32>
    %80 = arith.addf %79, %78 : vector<8x256xf32>
    %81 = arith.divf %79, %80 : vector<8x256xf32>
    %82 = vector.extract_strided_slice %81 {offsets = [0, 0], sizes = [8, 128], strides = [1, 1]} : vector<8x256xf32> to vector<8x128xf32>
    %83 = vector.extract_strided_slice %81 {offsets = [0, 128], sizes = [8, 128], strides = [1, 1]} : vector<8x256xf32> to vector<8x128xf32>
    %84 = vector.extract_strided_slice %75 {offsets = [0, 256], sizes = [8, 128], strides = [1, 1]} : vector<8x512xf32> to vector<8x128xf32>
    %85 = math.tanh %84 : vector<8x128xf32>
    %86 = vector.extract_strided_slice %75 {offsets = [0, 384], sizes = [8, 128], strides = [1, 1]} : vector<8x512xf32> to vector<8x128xf32>
    %87 = arith.negf %86 : vector<8x128xf32>
    %88 = math.exp %87 : vector<8x128xf32>
    %cst_52 = arith.constant 1.000000e+00 : f32
    %89 = vector.broadcast %cst_52 : f32 to vector<8x128xf32>
    %90 = arith.addf %89, %88 : vector<8x128xf32>
    %91 = arith.divf %89, %90 : vector<8x128xf32>
    %92 = arith.mulf %83, %23 : vector<8x128xf32>
    %93 = arith.mulf %82, %85 : vector<8x128xf32>
    %94 = arith.addf %92, %93 : vector<8x128xf32>
    %95 = math.tanh %94 : vector<8x128xf32>
    %96 = arith.mulf %91, %95 : vector<8x128xf32>
    %c0_53 = arith.constant 0 : index
    %c0_54 = arith.constant 0 : index
    %c0_55 = arith.constant 0 : index
    %97 = vector.load %arg8[%c0_53, %c0_54, %c0_55] : memref<1x128x128xf32, #tpu.memory_space<vmem>>, vector<1x128x128xf32>
    %98 = vector.shape_cast %97 : vector<1x128x128xf32> to vector<128x128xf32>
    %cst_56 = arith.constant dense<0.000000e+00> : vector<8x128xf32>
    %99 = tpu.matmul %96, %98, %cst_56 {dimension_numbers = #tpu.dot_dimension_numbers<[1], [0], [0], [1], [0, 0, 1, 1], [], []>} : vector<8x128xf32>, vector<128x128xf32>, vector<8x128xf32> -> vector<8x128xf32>
    %100 = arith.addf %66, %99 : vector<8x128xf32>
    %c0_57 = arith.constant 0 : index
    %c0_58 = arith.constant 0 : index
    %c0_59 = arith.constant 0 : index
    %101 = vector.load %arg9[%c0_57, %c0_58, %c0_59] : memref<1x1x128xf32, #tpu.memory_space<vmem>>, vector<1x1x128xf32>
    %102 = vector.shape_cast %101 : vector<1x1x128xf32> to vector<1x128xf32>
    %103 = vector.broadcast %102 : vector<1x128xf32> to vector<8x128xf32>
    %104 = arith.addf %100, %103 : vector<8x128xf32>
    %c0_60 = arith.constant 0 : index
    %c0_61 = arith.constant 0 : index
    %c0_62 = arith.constant 0 : index
    %105 = vector.load %arg10[%c0_60, %c0_61, %c0_62] : memref<1x128x128xf32, #tpu.memory_space<vmem>>, vector<1x128x128xf32>
    %106 = vector.shape_cast %105 : vector<1x128x128xf32> to vector<128x128xf32>
    %cst_63 = arith.constant dense<0.000000e+00> : vector<8x128xf32>
    %107 = tpu.matmul %94, %106, %cst_63 {dimension_numbers = #tpu.dot_dimension_numbers<[1], [0], [0], [1], [0, 0, 1, 1], [], []>} : vector<8x128xf32>, vector<128x128xf32>, vector<8x128xf32> -> vector<8x128xf32>
    %108 = arith.addf %23, %107 : vector<8x128xf32>
    %c0_64 = arith.constant 0 : index
    %c0_65 = arith.constant 0 : index
    %c0_66 = arith.constant 0 : index
    %109 = vector.load %arg11[%c0_64, %c0_65, %c0_66] : memref<1x1x128xf32, #tpu.memory_space<vmem>>, vector<1x1x128xf32>
    %110 = vector.shape_cast %109 : vector<1x1x128xf32> to vector<1x128xf32>
    %111 = vector.broadcast %110 : vector<1x128xf32> to vector<8x128xf32>
    %112 = arith.addf %108, %111 : vector<8x128xf32>
    %c1_67 = arith.constant 1 : index
    %c0_68 = arith.constant 0 : index
    %c0_69 = arith.constant 0 : index
    %113 = vector.load %arg4[%c1_67, %c0_68, %c0_69] : memref<3x128x128xf32, #tpu.memory_space<vmem>>, vector<1x128x128xf32>
    %114 = vector.shape_cast %113 : vector<1x128x128xf32> to vector<128x128xf32>
    %cst_70 = arith.constant dense<0.000000e+00> : vector<8x128xf32>
    %115 = tpu.matmul %96, %114, %cst_70 {dimension_numbers = #tpu.dot_dimension_numbers<[1], [0], [0], [1], [0, 0, 1, 1], [], []>} : vector<8x128xf32>, vector<128x128xf32>, vector<8x128xf32> -> vector<8x128xf32>
    %c1_71 = arith.constant 1 : index
    %c0_72 = arith.constant 0 : index
    %c0_73 = arith.constant 0 : index
    %116 = vector.load %arg5[%c1_71, %c0_72, %c0_73] : memref<3x1x128xf32, #tpu.memory_space<vmem>>, vector<1x1x128xf32>
    %117 = vector.shape_cast %116 : vector<1x1x128xf32> to vector<1x128xf32>
    %118 = vector.broadcast %117 : vector<1x128xf32> to vector<8x128xf32>
    %119 = arith.addf %115, %118 : vector<8x128xf32>
    %cst_74 = arith.constant 0.000000e+00 : f32
    %120 = vector.broadcast %cst_74 : f32 to vector<8x128xf32>
    %121 = arith.maximumf %119, %120 : vector<8x128xf32>
    %c1_75 = arith.constant 1 : index
    %c0_76 = arith.constant 0 : index
    %c0_77 = arith.constant 0 : index
    %122 = vector.load %arg6[%c1_75, %c0_76, %c0_77] : memref<3x128x128xf32, #tpu.memory_space<vmem>>, vector<1x128x128xf32>
    %123 = vector.shape_cast %122 : vector<1x128x128xf32> to vector<128x128xf32>
    %cst_78 = arith.constant dense<0.000000e+00> : vector<8x128xf32>
    %124 = tpu.matmul %121, %123, %cst_78 {dimension_numbers = #tpu.dot_dimension_numbers<[1], [0], [0], [1], [0, 0, 1, 1], [], []>} : vector<8x128xf32>, vector<128x128xf32>, vector<8x128xf32> -> vector<8x128xf32>
    %c1_79 = arith.constant 1 : index
    %c0_80 = arith.constant 0 : index
    %c0_81 = arith.constant 0 : index
    %125 = vector.load %arg7[%c1_79, %c0_80, %c0_81] : memref<3x1x128xf32, #tpu.memory_space<vmem>>, vector<1x1x128xf32>
    %126 = vector.shape_cast %125 : vector<1x1x128xf32> to vector<1x128xf32>
    %127 = vector.broadcast %126 : vector<1x128xf32> to vector<8x128xf32>
    %128 = arith.addf %124, %127 : vector<8x128xf32>
    %c1_82 = arith.constant 1 : index
    %c0_83 = arith.constant 0 : index
    %c0_84 = arith.constant 0 : index
    %129 = vector.load %arg16[%c1_82, %c0_83, %c0_84] : memref<3x8x128xf32, #tpu.memory_space<vmem>>, vector<1x8x128xf32>
    %130 = vector.shape_cast %129 : vector<1x8x128xf32> to vector<8x128xf32>
    %131 = vector.shape_cast %128 : vector<8x128xf32> to vector<1x8x128xf32>
    tpu.vector_store %arg16[%c1_82, %c0_83, %c0_84], %131 {strides = array<i32>} : memref<3x8x128xf32, #tpu.memory_space<vmem>>, vector<1x8x128xf32>,
    %132 = vector.extract_strided_slice %2 {offsets = [0, 1024], sizes = [8, 512], strides = [1, 1]} : vector<8x1536xf32> to vector<8x512xf32>
    %c2 = arith.constant 2 : index
    %c0_85 = arith.constant 0 : index
    %c0_86 = arith.constant 0 : index
    %133 = vector.load %arg3[%c2, %c0_85, %c0_86] : memref<3x1x512xf32, #tpu.memory_space<vmem>>, vector<1x1x512xf32>
    %134 = vector.shape_cast %133 : vector<1x1x512xf32> to vector<1x512xf32>
    %135 = vector.broadcast %134 : vector<1x512xf32> to vector<8x512xf32>
    %136 = arith.addf %132, %135 : vector<8x512xf32>
    %c2_87 = arith.constant 2 : index
    %c0_88 = arith.constant 0 : index
    %c0_89 = arith.constant 0 : index
    %137 = vector.load %arg2[%c2_87, %c0_88, %c0_89] : memref<3x128x512xf32, #tpu.memory_space<vmem>>, vector<1x128x512xf32>
    %138 = vector.shape_cast %137 : vector<1x128x512xf32> to vector<128x512xf32>
    %cst_90 = arith.constant dense<0.000000e+00> : vector<8x512xf32>
    %139 = tpu.matmul %104, %138, %cst_90 {dimension_numbers = #tpu.dot_dimension_numbers<[1], [0], [0], [1], [0, 0, 1, 1], [], []>} : vector<8x128xf32>, vector<128x512xf32>, vector<8x512xf32> -> vector<8x512xf32>
    %140 = arith.addf %136, %139 : vector<8x512xf32>
    %141 = vector.extract_strided_slice %140 {offsets = [0, 0], sizes = [8, 256], strides = [1, 1]} : vector<8x512xf32> to vector<8x256xf32>
    %142 = arith.negf %141 : vector<8x256xf32>
    %143 = math.exp %142 : vector<8x256xf32>
    %cst_91 = arith.constant 1.000000e+00 : f32
    %144 = vector.broadcast %cst_91 : f32 to vector<8x256xf32>
    %145 = arith.addf %144, %143 : vector<8x256xf32>
    %146 = arith.divf %144, %145 : vector<8x256xf32>
    %147 = vector.extract_strided_slice %146 {offsets = [0, 0], sizes = [8, 128], strides = [1, 1]} : vector<8x256xf32> to vector<8x128xf32>
    %148 = vector.extract_strided_slice %146 {offsets = [0, 128], sizes = [8, 128], strides = [1, 1]} : vector<8x256xf32> to vector<8x128xf32>
    %149 = vector.extract_strided_slice %140 {offsets = [0, 256], sizes = [8, 128], strides = [1, 1]} : vector<8x512xf32> to vector<8x128xf32>
    %150 = math.tanh %149 : vector<8x128xf32>
    %151 = vector.extract_strided_slice %140 {offsets = [0, 384], sizes = [8, 128], strides = [1, 1]} : vector<8x512xf32> to vector<8x128xf32>
    %152 = arith.negf %151 : vector<8x128xf32>
    %153 = math.exp %152 : vector<8x128xf32>
    %cst_92 = arith.constant 1.000000e+00 : f32
    %154 = vector.broadcast %cst_92 : f32 to vector<8x128xf32>
    %155 = arith.addf %154, %153 : vector<8x128xf32>
    %156 = arith.divf %154, %155 : vector<8x128xf32>
    %157 = arith.mulf %148, %112 : vector<8x128xf32>
    %158 = arith.mulf %147, %150 : vector<8x128xf32>
    %159 = arith.addf %157, %158 : vector<8x128xf32>
    %160 = math.tanh %159 : vector<8x128xf32>
    %161 = arith.mulf %156, %160 : vector<8x128xf32>
    %c2_93 = arith.constant 2 : index
    %c0_94 = arith.constant 0 : index
    %c0_95 = arith.constant 0 : index
    %162 = vector.load %arg4[%c2_93, %c0_94, %c0_95] : memref<3x128x128xf32, #tpu.memory_space<vmem>>, vector<1x128x128xf32>
    %163 = vector.shape_cast %162 : vector<1x128x128xf32> to vector<128x128xf32>
    %cst_96 = arith.constant dense<0.000000e+00> : vector<8x128xf32>
    %164 = tpu.matmul %161, %163, %cst_96 {dimension_numbers = #tpu.dot_dimension_numbers<[1], [0], [0], [1], [0, 0, 1, 1], [], []>} : vector<8x128xf32>, vector<128x128xf32>, vector<8x128xf32> -> vector<8x128xf32>
    %c2_97 = arith.constant 2 : index
    %c0_98 = arith.constant 0 : index
    %c0_99 = arith.constant 0 : index
    %165 = vector.load %arg5[%c2_97, %c0_98, %c0_99] : memref<3x1x128xf32, #tpu.memory_space<vmem>>, vector<1x1x128xf32>
    %166 = vector.shape_cast %165 : vector<1x1x128xf32> to vector<1x128xf32>
    %167 = vector.broadcast %166 : vector<1x128xf32> to vector<8x128xf32>
    %168 = arith.addf %164, %167 : vector<8x128xf32>
    %cst_100 = arith.constant 0.000000e+00 : f32
    %169 = vector.broadcast %cst_100 : f32 to vector<8x128xf32>
    %170 = arith.maximumf %168, %169 : vector<8x128xf32>
    %c2_101 = arith.constant 2 : index
    %c0_102 = arith.constant 0 : index
    %c0_103 = arith.constant 0 : index
    %171 = vector.load %arg6[%c2_101, %c0_102, %c0_103] : memref<3x128x128xf32, #tpu.memory_space<vmem>>, vector<1x128x128xf32>
    %172 = vector.shape_cast %171 : vector<1x128x128xf32> to vector<128x128xf32>
    %cst_104 = arith.constant dense<0.000000e+00> : vector<8x128xf32>
    %173 = tpu.matmul %170, %172, %cst_104 {dimension_numbers = #tpu.dot_dimension_numbers<[1], [0], [0], [1], [0, 0, 1, 1], [], []>} : vector<8x128xf32>, vector<128x128xf32>, vector<8x128xf32> -> vector<8x128xf32>
    %c2_105 = arith.constant 2 : index
    %c0_106 = arith.constant 0 : index
    %c0_107 = arith.constant 0 : index
    %174 = vector.load %arg7[%c2_105, %c0_106, %c0_107] : memref<3x1x128xf32, #tpu.memory_space<vmem>>, vector<1x1x128xf32>
    %175 = vector.shape_cast %174 : vector<1x1x128xf32> to vector<1x128xf32>
    %176 = vector.broadcast %175 : vector<1x128xf32> to vector<8x128xf32>
    %177 = arith.addf %173, %176 : vector<8x128xf32>
    %c2_108 = arith.constant 2 : index
    %c0_109 = arith.constant 0 : index
    %c0_110 = arith.constant 0 : index
    %178 = vector.load %arg16[%c2_108, %c0_109, %c0_110] : memref<3x8x128xf32, #tpu.memory_space<vmem>>, vector<1x8x128xf32>
    %179 = vector.shape_cast %178 : vector<1x8x128xf32> to vector<8x128xf32>
    %180 = vector.shape_cast %177 : vector<8x128xf32> to vector<1x8x128xf32>
    tpu.vector_store %arg16[%c2_108, %c0_109, %c0_110], %180 {strides = array<i32>} : memref<3x8x128xf32, #tpu.memory_space<vmem>>, vector<1x8x128xf32>,
    return
  }
}

</mosaic_0001>

<bundles_post_ra>
// kernel: bifeedback_forward.1
= control target key start
LH: loop header
LB: loop body
LE: loop exit
PB: predicated region body
PF: predicated region fallthrough
CT: control target
= control target key end

     0   :  { %s3787_s0 = inlined_call_operand.hbm [shape: f32[8,128], index: 0, kind: input, shape index: {}]   ;;  %s3788_s1 = inlined_call_operand.hbm [shape: f32[128,1536], index: 1, kind: input, shape index: {}]   ;;  %s3789_s2 = inlined_call_operand.hbm [shape: f32[3,128,512], index: 2, kind: input, shape index: {}]   ;;  %s3790_s3 = inlined_call_operand.hbm [shape: f32[3,1,512], index: 3, kind: input, shape index: {}]   ;;  %s3791_s4 = inlined_call_operand.hbm [shape: f32[3,128,128], index: 4, kind: input, shape index: {}]   ;;  %s3792_s5 = inlined_call_operand.vmem [shape: f32[3,1,128], index: 5, kind: input, shape index: {}]   ;;  %s3793_s6 = inlined_call_operand.hbm [shape: f32[3,128,128], index: 6, kind: input, shape index: {}]   ;;  %s3794_s7 = inlined_call_operand.vmem [shape: f32[3,1,128], index: 7, kind: input, shape index: {}]   ;;  %s3795_s8 = inlined_call_operand.hbm [shape: f32[1,128,128], index: 8, kind: input, shape index: {}]   ;;  %s3796_s9 = inlined_call_operand.vmem [shape: f32[1,1,128], index: 9, kind: input, shape index: {}]   ;;  %s3797_s10 = inlined_call_operand.hbm [shape: f32[1,128,128], index: 10, kind: input, shape index: {}]   ;;  %s3798_s11 = inlined_call_operand.vmem [shape: f32[1,1,128], index: 11, kind: input, shape index: {}]   ;;  %s3799_s12 = inlined_call_operand.hbm [shape: f32[2,128,128], index: 12, kind: input, shape index: {}]   ;;  %s3800_s13 = inlined_call_operand.vmem [shape: f32[2,1,128], index: 13, kind: input, shape index: {}]   ;;  %s3801_s14 = inlined_call_operand.hbm [shape: f32[128,128], index: 14, kind: input, shape index: {}]   ;;  %s3802_s15 = inlined_call_operand.vmem [shape: f32[1,128], index: 15, kind: input, shape index: {}]   ;;  %s3803_s16 = inlined_call_operand.vmem [shape: f32[3,8,128], index: 16, kind: output, shape index: {}]  }
   0x1   :  { %3804 = sst [smem:[#allocation24_spill]] %s3787_s0 }
   0x2   :  { %21 = vsyncpa [#allocation3], 0 }
   0x3   :  { %22 = vsyncpa [#allocation5], 0 }
   0x4   :  { %23 = vsyncpa [#allocation8], 0 }
   0x5   :  { %24 = vsyncpa [#allocation11], 0 }
   0x6   :  { %25 = vsyncpa [#allocation14], 0 }
   0x7   :  { %26 = vsyncpa [#allocation17], 0  ;;  %s3301_s21 = smov [#allocation4]  }
   0x8   :  { %s42_s22 = sshll.u32 %s3301_s21, 4  ;;  %s43_s22 = int_to_ptr.vmem [resolvable:$true] %s42_s22 }
   0x9   :  { %s3097_s23 = scalar_lea.vmem %s43_s22, 24576  ;;  %p3102_p1 = scmp.lt.s32.totalorder %s43_s22, %s43_s22 }
   0xa   :  { %p3098_p0 = scmp.ne.s32.totalorder %s43_s22, %s3097_s23  ;;  %p3103_p2 = scmp.lt.s32.totalorder %s3097_s23, %s3097_s23 }
   0xc   :  { %p3104_p3 = por %p3103_p2, %p3102_p1 }
   0xe   :  { %p3105_p4 = pnand %p3104_p3, %p3098_p0 }
  0x10   :  { %3108 = shalt.err (!%p3105_p4)
}
  0x11   :  { %s3302_s24 = smov 1536   ;;  %s3303_s25 = smov 96  }
  0x12   :  { %48 = dma.hbm_to_vmem [thread:$0]  %s3788_s1, 24576, %s43_s22, [#allocation5], %s3302_s24, %s3302_s24, %s3303_s25  }
  0x13   :  { %s3304_s28 = smov [#allocation7]  }
  0x14   :  { %s66_s29 = sshll.u32 %s3304_s28, 4  ;;  %s67_s29 = int_to_ptr.vmem [resolvable:$true] %s66_s29 }
  0x15   :  { %s3117_s30 = scalar_lea.vmem %s67_s29, 192  ;;  %p3122_p6 = scmp.lt.s32.totalorder %s67_s29, %s67_s29 }
  0x16   :  { %p3118_p5 = scmp.ne.s32.totalorder %s67_s29, %s3117_s30  ;;  %p3123_p7 = scmp.lt.s32.totalorder %s3117_s30, %s3117_s30 }
  0x18   :  { %p3124_p8 = por %p3123_p7, %p3122_p6 }
  0x1a   :  { %p3125_p9 = pnand %p3124_p8, %p3118_p5 }
  0x1c   :  { %3128 = shalt.err (!%p3125_p9)
}
  0x1d   :  { %s3305_s0 = smov 64   ;;  %s3306_s17 = smov 4  }
  0x1e   :  { %72 = dma.hbm_to_vmem [thread:$0]  %s3790_s3, 192, %s67_s29, [#allocation8], %s3305_s0, %s3305_s0, %s3306_s17  }
  0x1f   :  { %s3307_s20 = smov [#allocation10]   ;;  %s3308_s23 = smov [#allocation13]  }
  0x20   :  { %s92_s21 = sshll.u32 %s3307_s20, 4  ;;  %s120_s1 = sshll.u32 %s3308_s23, 4  ;;  %s93_s21 = int_to_ptr.vmem [resolvable:$true] %s92_s21  ;;  %s121_s1 = int_to_ptr.vmem [resolvable:$true] %s120_s1 }
  0x21   :  { %s3137_s22 = scalar_lea.vmem %s93_s21, 6144  ;;  %p3142_p11 = scmp.lt.s32.totalorder %s93_s21, %s93_s21 }
  0x22   :  { %p3138_p10 = scmp.ne.s32.totalorder %s93_s21, %s3137_s22  ;;  %p3143_p12 = scmp.lt.s32.totalorder %s3137_s22, %s3137_s22 }
  0x24   :  { %p3144_p13 = por %p3143_p12, %p3142_p11 }
  0x26   :  { %p3145_p0 = pnand %p3144_p13, %p3138_p10 }
  0x28   :  { %3148 = shalt.err (!%p3145_p0)
}
  0x29   :  { %s3309_s24 = smov 128   ;;  %s3310_s25 = smov 8  }
  0x2a   :  { %98 = dma.hbm_to_vmem [thread:$0]  %s3793_s6, 6144, %s93_s21, [#allocation11], %s3309_s24, %s3309_s24, %s3310_s25  }
  0x2b   :  { %s3157_s27 = scalar_lea.vmem %s121_s1, 2048  ;;  %p3162_p2 = scmp.lt.s32.totalorder %s121_s1, %s121_s1 }
  0x2c   :  { %p3158_p1 = scmp.ne.s32.totalorder %s121_s1, %s3157_s27  ;;  %p3163_p3 = scmp.lt.s32.totalorder %s3157_s27, %s3157_s27 }
  0x2e   :  { %p3164_p4 = por %p3163_p3, %p3162_p2 }
  0x30   :  { %p3165_p5 = pnand %p3164_p4, %p3158_p1 }
  0x32   :  { %3168 = shalt.err (!%p3165_p5)
}
  0x33   :  { %126 = dma.hbm_to_vmem [thread:$0]  %s3797_s10, 2048, %s121_s1, [#allocation14], %s3309_s24, %s3309_s24, %s3310_s25  }
  0x34   :  { %s3311_s30 = smov [#allocation2]   ;;  %s3312_s17 = smov [#allocation6]  }
  0x35   :  { %s33_s0 = sshll.u32 %s3311_s30, 4  ;;  %s54_s18 = sshll.u32 %s3312_s17, 4  ;;  %s34_s0 = int_to_ptr.vmem [resolvable:$true] %s33_s0  ;;  %s55_s18 = int_to_ptr.vmem [resolvable:$true] %s54_s18 }
  0x36   :  { %s3177_s6 = scalar_lea.vmem %s34_s0, 128  ;;  %p3182_p7 = scmp.lt.s32.totalorder %s34_s0, %s34_s0 }
  0x37   :  { %p3178_p6 = scmp.ne.s32.totalorder %s34_s0, %s3177_s6  ;;  %p3183_p8 = scmp.lt.s32.totalorder %s3177_s6, %s3177_s6 }
  0x39   :  { %p3184_p9 = por %p3183_p8, %p3182_p7 }
  0x3b   :  { %p3185_p10 = pnand %p3184_p9, %p3178_p6 }
  0x3d   :  { %3188 = shalt.err (!%p3185_p10)
}
  0x3e   :  { %s3805_s21 = sld [smem:[#allocation24_spill]]  ;;  %s3197_s23 = scalar_lea.vmem %s55_s18, 24576 }
  0x3f   :  { %p3198_p11 = scmp.ne.s32.totalorder %s55_s18, %s3197_s23  ;;  %p3202_p12 = scmp.lt.s32.totalorder %s55_s18, %s55_s18 }
  0x40   :  { %p3203_p13 = scmp.lt.s32.totalorder %s3197_s23, %s3197_s23 }
  0x42   :  { %p3204_p0 = por %p3203_p13, %p3202_p12 }
  0x44   :  { %36 = dma.hbm_to_vmem [thread:$0]  %s3805_s21, 128, %s34_s0, [#allocation3]  }
  0x45   :  { %p3205_p1 = pnand %p3204_p0, %p3198_p11 }
  0x47   :  { %3208 = shalt.err (!%p3205_p1)
}
  0x48   :  { %s3313_s10 = smov 512   ;;  %s3314_s1 = smov 32  }
  0x49   :  { %60 = dma.hbm_to_vmem [thread:$0]  %s3789_s2, 24576, %s55_s18, [#allocation5], %s3313_s10, %s3313_s10, %s3314_s1  }
  0x4a   :  { %s3315_s3 = smov [#allocation9]   ;;  %s3316_s28 = smov [#allocation12]  }
  0x4b   :  { %s78_s27 = sshll.u32 %s3315_s3, 4  ;;  %s106_s29 = sshll.u32 %s3316_s28, 4  ;;  %s79_s27 = int_to_ptr.vmem [resolvable:$true] %s78_s27  ;;  %s107_s29 = int_to_ptr.vmem [resolvable:$true] %s106_s29 }
  0x4c   :  { %s3217_s30 = scalar_lea.vmem %s79_s27, 6144  ;;  %p3222_p3 = scmp.lt.s32.totalorder %s79_s27, %s79_s27 }
  0x4d   :  { %p3218_p2 = scmp.ne.s32.totalorder %s79_s27, %s3217_s30  ;;  %p3223_p4 = scmp.lt.s32.totalorder %s3217_s30, %s3217_s30 }
  0x4f   :  { %p3224_p5 = por %p3223_p4, %p3222_p3 }
  0x51   :  { %p3225_p6 = pnand %p3224_p5, %p3218_p2 }
  0x53   :  { %3228 = shalt.err (!%p3225_p6)
}
  0x54   :  { %84 = dma.hbm_to_vmem [thread:$0]  %s3791_s4, 6144, %s79_s27, [#allocation8], %s3309_s24, %s3309_s24, %s3310_s25  }
  0x55   :  { %s3237_s2 = scalar_lea.vmem %s107_s29, 2048  ;;  %p3242_p8 = scmp.lt.s32.totalorder %s107_s29, %s107_s29 }
  0x56   :  { %p3238_p7 = scmp.ne.s32.totalorder %s107_s29, %s3237_s2  ;;  %p3243_p9 = scmp.lt.s32.totalorder %s3237_s2, %s3237_s2 }
  0x58   :  { %p3244_p10 = por %p3243_p9, %p3242_p8 }
  0x5a   :  { %p3245_p11 = pnand %p3244_p10, %p3238_p7 }
  0x5c   :  { %3248 = shalt.err (!%p3245_p11)
}
  0x5d   :  { %112 = dma.hbm_to_vmem [thread:$0]  %s3795_s8, 2048, %s107_s29, [#allocation11], %s3309_s24, %s3309_s24, %s3310_s25  }
  0x5e   :  { %s3317_s19 = smov [#allocation15]   ;;  %s3318_s21 = smov [#allocation16]  }
  0x5f   :  { %s134_s20 = sshll.u32 %s3317_s19, 4  ;;  %s148_s23 = sshll.u32 %s3318_s21, 4  ;;  %s135_s20 = int_to_ptr.vmem [resolvable:$true] %s134_s20  ;;  %s149_s23 = int_to_ptr.vmem [resolvable:$true] %s148_s23 }
  0x60   :  { %s3257_s4 = scalar_lea.vmem %s135_s20, 4096  ;;  %p3262_p13 = scmp.lt.s32.totalorder %s135_s20, %s135_s20 }
  0x61   :  { %p3258_p12 = scmp.ne.s32.totalorder %s135_s20, %s3257_s4  ;;  %p3263_p0 = scmp.lt.s32.totalorder %s3257_s4, %s3257_s4 }
  0x63   :  { %p3264_p1 = por %p3263_p0, %p3262_p13 }
  0x65   :  { %p3265_p2 = pnand %p3264_p1, %p3258_p12 }
  0x67   :  { %3268 = shalt.err (!%p3265_p2)
}
  0x68   :  { %140 = dma.hbm_to_vmem [thread:$0]  %s3799_s12, 4096, %s135_s20, [#allocation14], %s3309_s24, %s3309_s24, %s3310_s25  }
  0x69   :  { %s3277_s8 = scalar_lea.vmem %s149_s23, 2048  ;;  %p3282_p4 = scmp.lt.s32.totalorder %s149_s23, %s149_s23 }
  0x6a   :  { %p3278_p3 = scmp.ne.s32.totalorder %s149_s23, %s3277_s8  ;;  %p3283_p5 = scmp.lt.s32.totalorder %s3277_s8, %s3277_s8 }
  0x6c   :  { %p3284_p6 = por %p3283_p5, %p3282_p4 }
  0x6e   :  { %p3285_p7 = pnand %p3284_p6, %p3278_p3 }
  0x70   :  { %3288 = shalt.err (!%p3285_p7)
}
  0x71   :  { %154 = dma.hbm_to_vmem [thread:$0]  %s3801_s14, 2048, %s149_s23, [#allocation17], %s3309_s24, %s3309_s24, %s3310_s25  }
  0x72   :  { %3289 = dma.done.wait [#allocation3], 128  }
  0x73   :  { %3290 = vsyncadd [#allocation3], 4294967168 }
  0x74   :  { %3291 = dma.done.wait [#allocation5], 49152  }
  0x75   :  { %3292 = vsyncadd [#allocation5], 4294918144 }
  0x76   :  { %3293 = dma.done.wait [#allocation8], 6336  }
  0x77   :  { %3294 = vsyncadd [#allocation8], 4294960960 }
  0x78   :  { %3295 = dma.done.wait [#allocation11], 8192  }
  0x79   :  { %3296 = vsyncadd [#allocation11], 4294959104 }
  0x7a   :  { %3297 = dma.done.wait [#allocation14], 6144  }
  0x7b   :  { %3298 = vsyncadd [#allocation14], 4294961152 }
  0x7c   :  { %3299 = dma.done.wait [#allocation17], 2048  }
  0x7d   :  { %3300 = vsyncadd [#allocation17], 4294965248  ;;  %v3319_v0 = vmov 0.0   ;;  %v369_v1 = vld [vmem:[#allocation4 + $0x5a8] sm:$0xff]  ;;  %v368_v2 = vld [vmem:[#allocation4 + $0x5a0] sm:$0xff]  ;;  %vm3320_vm0 = vmmov 0  }
  0x7e   :  { %444 = vmatprep.mubr.f32.mxu0 %v3319_v0  ;;  %514 = vmatprep.mubr.f32.mxu1 %v3319_v0  ;;  %v357_v3 = vld [vmem:[#allocation4 + $0x548] sm:$0xff]  ;;  %v356_v4 = vld [vmem:[#allocation4 + $0x540] sm:$0xff]  ;;  %v371_v8 = vld [vmem:[#allocation4 + $0x5b8] sm:$0xff] }
  0x7f   :  { %380 = vmatprep.subr.mxu0 %v369_v1  ;;  %v345_v5 = vld [vmem:[#allocation4 + $0x4e8] sm:$0xff]  ;;  %v344_v6 = vld [vmem:[#allocation4 + $0x4e0] sm:$0xff]  ;;  %450 = vmatprep.subr.mxu1 %v371_v8  ;;  %v370_v10 = vld [vmem:[#allocation4 + $0x5b0] sm:$0xff] }
  0x80   :  { %381 = vmatpush1.msra.mxu0 %v368_v2  ;;  %v333_v7 = vld [vmem:[#allocation4 + $0x488] sm:$0xff]  ;;  %v332_v9 = vld [vmem:[#allocation4 + $0x480] sm:$0xff]  ;;  %v359_v11 = vld [vmem:[#allocation4 + $0x558] sm:$0xff]  ;;  %451 = vmatpush1.msra.mxu1 %v370_v10 }
  0x81   :  { %382 = vmatprep.subr.mxu0 %v357_v3  ;;  %v321_v12 = vld [vmem:[#allocation4 + $0x428] sm:$0xff]  ;;  %v358_v13 = vld [vmem:[#allocation4 + $0x550] sm:$0xff]  ;;  %v320_v14 = vld [vmem:[#allocation4 + $0x420] sm:$0xff]  ;;  %452 = vmatprep.subr.mxu1 %v359_v11 }
  0x82   :  { %383 = vmatpush1.msra.mxu0 %v356_v4  ;;  %v347_v15 = vld [vmem:[#allocation4 + $0x4f8] sm:$0xff]  ;;  %v346_v16 = vld [vmem:[#allocation4 + $0x4f0] sm:$0xff]  ;;  %v309_v17 = vld [vmem:[#allocation4 + $0x3c8] sm:$0xff]  ;;  %453 = vmatpush1.msra.mxu1 %v358_v13 }
  0x83   :  { %384 = vmatprep.subr.mxu0 %v345_v5  ;;  %v335_v18 = vld [vmem:[#allocation4 + $0x498] sm:$0xff]  ;;  %v308_v19 = vld [vmem:[#allocation4 + $0x3c0] sm:$0xff]  ;;  %454 = vmatprep.subr.mxu1 %v347_v15  ;;  %v334_v20 = vld [vmem:[#allocation4 + $0x490] sm:$0xff] }
  0x84   :  { %385 = vmatpush1.msra.mxu0 %v344_v6  ;;  %v297_v21 = vld [vmem:[#allocation4 + $0x368] sm:$0xff]  ;;  %455 = vmatpush1.msra.mxu1 %v346_v16  ;;  %v323_v22 = vld [vmem:[#allocation4 + $0x438] sm:$0xff]  ;;  %v296_v23 = vld [vmem:[#allocation4 + $0x360] sm:$0xff] }
  0x85   :  { %386 = vmatprep.subr.mxu0 %v333_v7  ;;  %456 = vmatprep.subr.mxu1 %v335_v18  ;;  %v322_v24 = vld [vmem:[#allocation4 + $0x430] sm:$0xff]  ;;  %v285_v25 = vld [vmem:[#allocation4 + $0x308] sm:$0xff]  ;;  %v311_v26 = vld [vmem:[#allocation4 + $0x3d8] sm:$0xff] }
  0x86   :  { %387 = vmatpush1.msra.mxu0 %v332_v9  ;;  %457 = vmatpush1.msra.mxu1 %v334_v20  ;;  %v284_v27 = vld [vmem:[#allocation4 + $0x300] sm:$0xff]  ;;  %v310_v28 = vld [vmem:[#allocation4 + $0x3d0] sm:$0xff]  ;;  %v273_v29 = vld [vmem:[#allocation4 + $0x2a8] sm:$0xff] }
  0x87   :  { %388 = vmatprep.subr.mxu0 %v321_v12  ;;  %458 = vmatprep.subr.mxu1 %v323_v22  ;;  %v299_v30 = vld [vmem:[#allocation4 + $0x378] sm:$0xff]  ;;  %v272_v31 = vld [vmem:[#allocation4 + $0x2a0] sm:$0xff]  ;;  %v298_v32 = vld [vmem:[#allocation4 + $0x370] sm:$0xff] }
  0x88   :  { %389 = vmatpush1.msra.mxu0 %v320_v14  ;;  %459 = vmatpush1.msra.mxu1 %v322_v24  ;;  %v261_v33 = vld [vmem:[#allocation4 + $0x248] sm:$0xff]  ;;  %v287_v34 = vld [vmem:[#allocation4 + $0x318] sm:$0xff]  ;;  %v260_v35 = vld [vmem:[#allocation4 + $0x240] sm:$0xff] }
  0x89   :  { %390 = vmatprep.subr.mxu0 %v309_v17  ;;  %460 = vmatprep.subr.mxu1 %v311_v26  ;;  %v286_v36 = vld [vmem:[#allocation4 + $0x310] sm:$0xff]  ;;  %v249_v37 = vld [vmem:[#allocation4 + $0x1e8] sm:$0xff]  ;;  %v275_v38 = vld [vmem:[#allocation4 + $0x2b8] sm:$0xff] }
  0x8a   :  { %391 = vmatpush1.msra.mxu0 %v308_v19  ;;  %461 = vmatpush1.msra.mxu1 %v310_v28  ;;  %v248_v39 = vld [vmem:[#allocation4 + $0x1e0] sm:$0xff]  ;;  %v274_v40 = vld [vmem:[#allocation4 + $0x2b0] sm:$0xff]  ;;  %v237_v41 = vld [vmem:[#allocation4 + $0x188] sm:$0xff] }
  0x8b   :  { %392 = vmatprep.subr.mxu0 %v297_v21  ;;  %462 = vmatprep.subr.mxu1 %v299_v30  ;;  %v263_v42 = vld [vmem:[#allocation4 + $0x258] sm:$0xff]  ;;  %v236_v43 = vld [vmem:[#allocation4 + $0x180] sm:$0xff]  ;;  %v262_v44 = vld [vmem:[#allocation4 + $0x250] sm:$0xff] }
  0x8c   :  { %393 = vmatpush1.msra.mxu0 %v296_v23  ;;  %463 = vmatpush1.msra.mxu1 %v298_v32  ;;  %v225_v45 = vld [vmem:[#allocation4 + $0x128] sm:$0xff]  ;;  %v251_v46 = vld [vmem:[#allocation4 + $0x1f8] sm:$0xff]  ;;  %v224_v47 = vld [vmem:[#allocation4 + $0x120] sm:$0xff] }
  0x8d   :  { %394 = vmatprep.subr.mxu0 %v285_v25  ;;  %464 = vmatprep.subr.mxu1 %v287_v34  ;;  %v250_v48 = vld [vmem:[#allocation4 + $0x1f0] sm:$0xff]  ;;  %v213_v49 = vld [vmem:[#allocation4 + $0xc8] sm:$0xff]  ;;  %v239_v50 = vld [vmem:[#allocation4 + $0x198] sm:$0xff] }
  0x8e   :  { %395 = vmatpush1.msra.mxu0 %v284_v27  ;;  %465 = vmatpush1.msra.mxu1 %v286_v36  ;;  %v212_v51 = vld [vmem:[#allocation4 + $0xc0] sm:$0xff]  ;;  %v238_v52 = vld [vmem:[#allocation4 + $0x190] sm:$0xff]  ;;  %v201_v53 = vld [vmem:[#allocation4 + $0x68] sm:$0xff] }
  0x8f   :  { %396 = vmatprep.subr.mxu0 %v273_v29  ;;  %466 = vmatprep.subr.mxu1 %v275_v38  ;;  %v227_v54 = vld [vmem:[#allocation4 + $0x138] sm:$0xff]  ;;  %v200_v55 = vld [vmem:[#allocation4 + $0x60] sm:$0xff]  ;;  %v226_v56 = vld [vmem:[#allocation4 + $0x130] sm:$0xff] }
  0x90   :  { %397 = vmatpush1.msra.mxu0 %v272_v31  ;;  %467 = vmatpush1.msra.mxu1 %v274_v40  ;;  %v189_v57 = vld [vmem:[#allocation4 + $0x8] sm:$0xff]  ;;  %v215_v58 = vld [vmem:[#allocation4 + $0xd8] sm:$0xff]  ;;  %v188_v59 = vld [vmem:[#allocation4] sm:$0xff] }
  0x91   :  { %398 = vmatprep.subr.mxu0 %v261_v33  ;;  %468 = vmatprep.subr.mxu1 %v263_v42  ;;  %v214_v60 = vld [vmem:[#allocation4 + $0xd0] sm:$0xff]  ;;  %v3456_v61 = vld [vmem:[#allocation2] sm:$0xff]  ;;  %v373_v1 = vld [vmem:[#allocation4 + $0x5c8] sm:$0xff] }
  0x92   :  { %399 = vmatpush1.msra.mxu0 %v260_v35  ;;  %469 = vmatpush1.msra.mxu1 %v262_v44  ;;  %v203_v62 = vld [vmem:[#allocation4 + $0x78] sm:$0xff]  ;;  %v202_v63 = vld [vmem:[#allocation4 + $0x70] sm:$0xff]  ;;  %v372_v3 = vld [vmem:[#allocation4 + $0x5c0] sm:$0xff] }
  0x93   :  { %400 = vmatprep.subr.mxu0 %v249_v37  ;;  %470 = vmatprep.subr.mxu1 %v251_v46  ;;  %v191_v2 = vld [vmem:[#allocation4 + $0x18] sm:$0xff]  ;;  %v190_v4 = vld [vmem:[#allocation4 + $0x10] sm:$0xff]  ;;  %v361_v5 = vld [vmem:[#allocation4 + $0x568] sm:$0xff] }
  0x94   :  { %401 = vmatpush1.msra.mxu0 %v248_v39  ;;  %471 = vmatpush1.msra.mxu1 %v250_v48  ;;  %v360_v6 = vld [vmem:[#allocation4 + $0x560] sm:$0xff]  ;;  %v349_v7 = vld [vmem:[#allocation4 + $0x508] sm:$0xff] }
  0x95   :  { %402 = vmatprep.subr.mxu0 %v237_v41  ;;  %472 = vmatprep.subr.mxu1 %v239_v50  ;;  %v348_v8 = vld [vmem:[#allocation4 + $0x500] sm:$0xff]  ;;  %v337_v9 = vld [vmem:[#allocation4 + $0x4a8] sm:$0xff] }
  0x96   :  { %403 = vmatpush1.msra.mxu0 %v236_v43  ;;  %473 = vmatpush1.msra.mxu1 %v238_v52  ;;  %v336_v10 = vld [vmem:[#allocation4 + $0x4a0] sm:$0xff]  ;;  %v325_v11 = vld [vmem:[#allocation4 + $0x448] sm:$0xff] }
  0x97   :  { %404 = vmatprep.subr.mxu0 %v225_v45  ;;  %474 = vmatprep.subr.mxu1 %v227_v54  ;;  %v324_v12 = vld [vmem:[#allocation4 + $0x440] sm:$0xff]  ;;  %v313_v13 = vld [vmem:[#allocation4 + $0x3e8] sm:$0xff] }
  0x98   :  { %405 = vmatpush1.msra.mxu0 %v224_v47  ;;  %475 = vmatpush1.msra.mxu1 %v226_v56  ;;  %v312_v14 = vld [vmem:[#allocation4 + $0x3e0] sm:$0xff]  ;;  %v301_v15 = vld [vmem:[#allocation4 + $0x388] sm:$0xff] }
  0x99   :  { %406 = vmatprep.subr.mxu0 %v213_v49  ;;  %476 = vmatprep.subr.mxu1 %v215_v58  ;;  %v300_v16 = vld [vmem:[#allocation4 + $0x380] sm:$0xff]  ;;  %v289_v17 = vld [vmem:[#allocation4 + $0x328] sm:$0xff] }
  0x9a   :  { %407 = vmatpush1.msra.mxu0 %v212_v51  ;;  %477 = vmatpush1.msra.mxu1 %v214_v60  ;;  %v288_v18 = vld [vmem:[#allocation4 + $0x320] sm:$0xff]  ;;  %v277_v19 = vld [vmem:[#allocation4 + $0x2c8] sm:$0xff] }
  0x9b   :  { %408 = vmatprep.subr.mxu0 %v201_v53  ;;  %478 = vmatprep.subr.mxu1 %v203_v62  ;;  %v276_v20 = vld [vmem:[#allocation4 + $0x2c0] sm:$0xff]  ;;  %v265_v21 = vld [vmem:[#allocation4 + $0x268] sm:$0xff] }
  0x9c   :  { %409 = vmatpush1.msra.mxu0 %v200_v55  ;;  %479 = vmatpush1.msra.mxu1 %v202_v63  ;;  %v264_v22 = vld [vmem:[#allocation4 + $0x260] sm:$0xff]  ;;  %v253_v23 = vld [vmem:[#allocation4 + $0x208] sm:$0xff] }
  0x9d   :  { %410 = vmatprep.subr.mxu0 %v189_v57  ;;  %480 = vmatprep.subr.mxu1 %v191_v2  ;;  %v252_v24 = vld [vmem:[#allocation4 + $0x200] sm:$0xff]  ;;  %v241_v25 = vld [vmem:[#allocation4 + $0x1a8] sm:$0xff] }
  0x9e   :  { %411 = vmatpush1.msra.mxu0 %v188_v59  ;;  %481 = vmatpush1.msra.mxu1 %v190_v4  ;;  %v240_v26 = vld [vmem:[#allocation4 + $0x1a0] sm:$0xff]  ;;  %v229_v27 = vld [vmem:[#allocation4 + $0x148] sm:$0xff] }
  0x9f   :  { %445 = vmatmul.mubr.f32.vlgmr.msra.gmra.mxu0 %v3456_v61  ;;  %521 = vmatprep.subr.mxu0 %v373_v1  ;;  %v228_v28 = vld [vmem:[#allocation4 + $0x140] sm:$0xff]  ;;  %v217_v29 = vld [vmem:[#allocation4 + $0xe8] sm:$0xff] }
  0xa0   :  { %522 = vmatpush1.msra.mxu0 %v372_v3  ;;  %515 = vmatmul.mubr.f32.vlgmr.msra.gmra.mxu1 %v3456_v61  ;;  %v216_v30 = vld [vmem:[#allocation4 + $0xe0] sm:$0xff]  ;;  %v205_v31 = vld [vmem:[#allocation4 + $0x88] sm:$0xff] }
  0xa1   :  { %523 = vmatprep.subr.mxu0 %v361_v5  ;;  %585 = vmatprep.mubr.f32.mxu0 %v3319_v0  ;;  %v204_v32 = vld [vmem:[#allocation4 + $0x80] sm:$0xff]  ;;  %v193_v33 = vld [vmem:[#allocation4 + $0x28] sm:$0xff] }
  0xa2   :  { %524 = vmatpush1.msra.mxu0 %v360_v6  ;;  %656 = vmatprep.mubr.f32.mxu1 %v3319_v0  ;;  %v192_v34 = vld [vmem:[#allocation4 + $0x20] sm:$0xff]  ;;  %v377_v35 = vld [vmem:[#allocation4 + $0x5e8] sm:$0xff] }
  0xa3   :  { %525 = vmatprep.subr.mxu0 %v349_v7  ;;  %v376_v36 = vld [vmem:[#allocation4 + $0x5e0] sm:$0xff]  ;;  %v365_v37 = vld [vmem:[#allocation4 + $0x588] sm:$0xff]  ;;  %v854_v7 = vld [vmem:[#allocation9 + $0x68] sm:$0xff] }
  0xa4   :  { %526 = vmatpush1.msra.mxu0 %v348_v8  ;;  %v364_v38 = vld [vmem:[#allocation4 + $0x580] sm:$0xff]  ;;  %v353_v39 = vld [vmem:[#allocation4 + $0x528] sm:$0xff] }
  0xa5   :  { %527 = vmatprep.subr.mxu0 %v337_v9  ;;  %v352_v40 = vld [vmem:[#allocation4 + $0x520] sm:$0xff]  ;;  %v341_v41 = vld [vmem:[#allocation4 + $0x4c8] sm:$0xff] }
  0xa6   :  { %528 = vmatpush1.msra.mxu0 %v336_v10  ;;  %v340_v42 = vld [vmem:[#allocation4 + $0x4c0] sm:$0xff]  ;;  %v329_v43 = vld [vmem:[#allocation4 + $0x468] sm:$0xff] }
  0xa7   :  { %529 = vmatprep.subr.mxu0 %v325_v11  ;;  %v328_v44 = vld [vmem:[#allocation4 + $0x460] sm:$0xff]  ;;  %v317_v45 = vld [vmem:[#allocation4 + $0x408] sm:$0xff]  ;;  %v850_v11 = vld [vmem:[#allocation9 + $0x48] sm:$0xff] }
  0xa8   :  { %530 = vmatpush1.msra.mxu0 %v324_v12  ;;  %v316_v46 = vld [vmem:[#allocation4 + $0x400] sm:$0xff]  ;;  %v305_v47 = vld [vmem:[#allocation4 + $0x3a8] sm:$0xff] }
  0xa9   :  { %531 = vmatprep.subr.mxu0 %v313_v13  ;;  %v304_v48 = vld [vmem:[#allocation4 + $0x3a0] sm:$0xff]  ;;  %v293_v49 = vld [vmem:[#allocation4 + $0x348] sm:$0xff] }
  0xaa   :  { %532 = vmatpush1.msra.mxu0 %v312_v14  ;;  %v292_v50 = vld [vmem:[#allocation4 + $0x340] sm:$0xff]  ;;  %v281_v51 = vld [vmem:[#allocation4 + $0x2e8] sm:$0xff] }
  0xab   :  { %533 = vmatprep.subr.mxu0 %v301_v15  ;;  %v280_v52 = vld [vmem:[#allocation4 + $0x2e0] sm:$0xff]  ;;  %v269_v53 = vld [vmem:[#allocation4 + $0x288] sm:$0xff]  ;;  %v846_v15 = vld [vmem:[#allocation9 + $0x28] sm:$0xff] }
  0xac   :  { %534 = vmatpush1.msra.mxu0 %v300_v16  ;;  %v268_v54 = vld [vmem:[#allocation4 + $0x280] sm:$0xff]  ;;  %v257_v55 = vld [vmem:[#allocation4 + $0x228] sm:$0xff] }
  0xad   :  { %535 = vmatprep.subr.mxu0 %v289_v17  ;;  %v256_v56 = vld [vmem:[#allocation4 + $0x220] sm:$0xff]  ;;  %v245_v57 = vld [vmem:[#allocation4 + $0x1c8] sm:$0xff] }
  0xae   :  { %536 = vmatpush1.msra.mxu0 %v288_v18  ;;  %v244_v58 = vld [vmem:[#allocation4 + $0x1c0] sm:$0xff]  ;;  %v233_v59 = vld [vmem:[#allocation4 + $0x168] sm:$0xff] }
  0xaf   :  { %537 = vmatprep.subr.mxu0 %v277_v19  ;;  %v232_v60 = vld [vmem:[#allocation4 + $0x160] sm:$0xff]  ;;  %v221_v62 = vld [vmem:[#allocation4 + $0x108] sm:$0xff]  ;;  %v842_v19 = vld [vmem:[#allocation9 + $0x8] sm:$0xff] }
  0xb0   :  { %538 = vmatpush1.msra.mxu0 %v276_v20  ;;  %v220_v63 = vld [vmem:[#allocation4 + $0x100] sm:$0xff]  ;;  %v209_v1 = vld [vmem:[#allocation4 + $0xa8] sm:$0xff] }
  0xb1   :  { %539 = vmatprep.subr.mxu0 %v265_v21  ;;  %v208_v2 = vld [vmem:[#allocation4 + $0xa0] sm:$0xff]  ;;  %v197_v3 = vld [vmem:[#allocation4 + $0x48] sm:$0xff]  ;;  %v375_v21 = vld [vmem:[#allocation4 + $0x5d8] sm:$0xff] }
  0xb2   :  { %540 = vmatpush1.msra.mxu0 %v264_v22  ;;  %v196_v4 = vld [vmem:[#allocation4 + $0x40] sm:$0xff]  ;;  %v853_v8 = vld [vmem:[#allocation9 + $0x60] sm:$0xff]  ;;  %592 = vmatprep.subr.mxu1 %v375_v21  ;;  %v807_v21 = vlaneseq }
  0xb3   :  { %541 = vmatprep.subr.mxu0 %v253_v23  ;;  %v856_v5 = vld [vmem:[#allocation9 + $0x78] sm:$0xff]  ;;  %v855_v6 = vld [vmem:[#allocation9 + $0x70] sm:$0xff]  ;;  %v849_v12 = vld [vmem:[#allocation9 + $0x40] sm:$0xff] }
  0xb4   :  { %542 = vmatpush1.msra.mxu0 %v252_v24  ;;  %v852_v9 = vld [vmem:[#allocation9 + $0x58] sm:$0xff]  ;;  %v851_v10 = vld [vmem:[#allocation9 + $0x50] sm:$0xff]  ;;  %v845_v16 = vld [vmem:[#allocation9 + $0x20] sm:$0xff] }
  0xb5   :  { %543 = vmatprep.subr.mxu0 %v241_v25  ;;  %v848_v13 = vld [vmem:[#allocation9 + $0x38] sm:$0xff]  ;;  %v847_v14 = vld [vmem:[#allocation9 + $0x30] sm:$0xff]  ;;  %v841_v20 = vld [vmem:[#allocation9] sm:$0xff] }
  0xb6   :  { %544 = vmatpush1.msra.mxu0 %v240_v26  ;;  %v844_v17 = vld [vmem:[#allocation9 + $0x18] sm:$0xff]  ;;  %v843_v18 = vld [vmem:[#allocation9 + $0x10] sm:$0xff]  ;;  %v374_v22 = vld [vmem:[#allocation4 + $0x5d0] sm:$0xff] }
  0xb7   :  { %545 = vmatprep.subr.mxu0 %v229_v27  ;;  %v363_v23 = vld [vmem:[#allocation4 + $0x578] sm:$0xff]  ;;  %v362_v24 = vld [vmem:[#allocation4 + $0x570] sm:$0xff]  ;;  %593 = vmatpush1.msra.mxu1 %v374_v22 }
  0xb8   :  { %546 = vmatpush1.msra.mxu0 %v228_v28  ;;  %v351_v25 = vld [vmem:[#allocation4 + $0x518] sm:$0xff]  ;;  %594 = vmatprep.subr.mxu1 %v363_v23  ;;  %v350_v26 = vld [vmem:[#allocation4 + $0x510] sm:$0xff] }
  0xb9   :  { %547 = vmatprep.subr.mxu0 %v217_v29  ;;  %595 = vmatpush1.msra.mxu1 %v362_v24  ;;  %v339_v27 = vld [vmem:[#allocation4 + $0x4b8] sm:$0xff]  ;;  %v338_v28 = vld [vmem:[#allocation4 + $0x4b0] sm:$0xff]  ;;  %v950_v24 = vld [vmem:[#allocation10 + $0x78] sm:$0xff] }
  0xba   :  { %548 = vmatpush1.msra.mxu0 %v216_v30  ;;  %596 = vmatprep.subr.mxu1 %v351_v25  ;;  %v327_v29 = vld [vmem:[#allocation4 + $0x458] sm:$0xff]  ;;  %v326_v30 = vld [vmem:[#allocation4 + $0x450] sm:$0xff]  ;;  %v3486_v25 = vshrl.u32 %v807_v21, 7 }
  0xbb   :  { %549 = vmatprep.subr.mxu0 %v205_v31  ;;  %597 = vmatpush1.msra.mxu1 %v350_v26  ;;  %v315_v31 = vld [vmem:[#allocation4 + $0x3f8] sm:$0xff]  ;;  %v198_v23 = vld [vmem:[#allocation4 + $0x50] sm:$0xff] }
  0xbc   :  { %550 = vmatpush1.msra.mxu0 %v204_v32  ;;  %598 = vmatprep.subr.mxu1 %v339_v27  ;;  %v314_v32 = vld [vmem:[#allocation4 + $0x3f0] sm:$0xff]  ;;  %v199_v22 = vld [vmem:[#allocation4 + $0x58] sm:$0xff] }
  0xbd   :  { %551 = vmatprep.subr.mxu0 %v193_v33  ;;  %599 = vmatpush1.msra.mxu1 %v338_v28  ;;  %v303_v33 = vld [vmem:[#allocation4 + $0x398] sm:$0xff]  ;;  %v3494_v28 = vsub.s32 0, %v3486_v25  ;;  %v1033_v21 = vld [vmem:[#allocation16 + $0x20] sm:$0xff] }
  0xbe   :  { %552 = vmatpush1.msra.mxu0 %v192_v34  ;;  %600 = vmatprep.subr.mxu1 %v327_v29  ;;  %v302_v34 = vld [vmem:[#allocation4 + $0x390] sm:$0xff]  ;;  %v949_v26 = vld [vmem:[#allocation10 + $0x70] sm:$0xff] }
  0xbf   :  { %586 = vmatmul.mubr.f32.vlgmr.msra.gmra.mxu0 %v3456_v61  ;;  %663 = vmatprep.subr.mxu0 %v377_v35  ;;  %v291_v35 = vld [vmem:[#allocation4 + $0x338] sm:$0xff]  ;;  %v805_v29 = vld [vmem:[#allocation7] sm:$0xf] }
  0xc0   :  { %664 = vmatpush1.msra.mxu0 %v376_v36  ;;  %727 = vmatprep.mubr.f32.mxu0 %v3319_v0  ;;  %v290_v36 = vld [vmem:[#allocation4 + $0x330] sm:$0xff] }
  0xc1   :  { %665 = vmatprep.subr.mxu0 %v365_v37  ;;  %601 = vmatpush1.msra.mxu1 %v326_v30  ;;  %v279_v37 = vld [vmem:[#allocation4 + $0x2d8] sm:$0xff]  ;;  %v947_v30 = vld [vmem:[#allocation10 + $0x60] sm:$0xff] }
  0xc2   :  { %666 = vmatpush1.msra.mxu0 %v364_v38  ;;  %602 = vmatprep.subr.mxu1 %v315_v31  ;;  %v278_v38 = vld [vmem:[#allocation4 + $0x2d0] sm:$0xff]  ;;  %v810_v31 = vrot.slane %v805_v29, %v3494_v28 }
  0xc3   :  { %667 = vmatprep.subr.mxu0 %v353_v39  ;;  %603 = vmatpush1.msra.mxu1 %v314_v32  ;;  %v267_v39 = vld [vmem:[#allocation4 + $0x278] sm:$0xff] }
  0xc4   :  { %668 = vmatpush1.msra.mxu0 %v352_v40  ;;  %604 = vmatprep.subr.mxu1 %v303_v33  ;;  %v266_v40 = vld [vmem:[#allocation4 + $0x270] sm:$0xff]  ;;  %v945_v32 = vld [vmem:[#allocation10 + $0x50] sm:$0xff] }
  0xc5   :  { %669 = vmatprep.subr.mxu0 %v341_v41  ;;  %605 = vmatpush1.msra.mxu1 %v302_v34  ;;  %v255_v41 = vld [vmem:[#allocation4 + $0x218] sm:$0xff]  ;;  %v3501_v34 = vsub.s32 3, %v3486_v25 }
  0xc6   :  { %670 = vmatpush1.msra.mxu0 %v340_v42  ;;  %606 = vmatprep.subr.mxu1 %v291_v35  ;;  %v254_v42 = vld [vmem:[#allocation4 + $0x210] sm:$0xff] }
  0xc7   :  { %671 = vmatprep.subr.mxu0 %v329_v43  ;;  %607 = vmatpush1.msra.mxu1 %v290_v36  ;;  %v243_v43 = vld [vmem:[#allocation4 + $0x1b8] sm:$0xff] }
  0xc8   :  { %672 = vmatpush1.msra.mxu0 %v328_v44  ;;  %608 = vmatprep.subr.mxu1 %v279_v37  ;;  %v242_v44 = vld [vmem:[#allocation4 + $0x1b0] sm:$0xff] }
  0xc9   :  { %673 = vmatprep.subr.mxu0 %v317_v45  ;;  %609 = vmatpush1.msra.mxu1 %v278_v38  ;;  %v231_v45 = vld [vmem:[#allocation4 + $0x158] sm:$0xff]  ;;  %v943_v38 = vld [vmem:[#allocation10 + $0x40] sm:$0xff] }
  0xca   :  { %674 = vmatpush1.msra.mxu0 %v316_v46  ;;  %610 = vmatprep.subr.mxu1 %v267_v39  ;;  %v230_v46 = vld [vmem:[#allocation4 + $0x150] sm:$0xff] }
  0xcb   :  { %675 = vmatprep.subr.mxu0 %v305_v47  ;;  %611 = vmatpush1.msra.mxu1 %v266_v40  ;;  %v219_v47 = vld [vmem:[#allocation4 + $0xf8] sm:$0xff] }
  0xcc   :  { %676 = vmatpush1.msra.mxu0 %v304_v48  ;;  %612 = vmatprep.subr.mxu1 %v255_v41  ;;  %v218_v48 = vld [vmem:[#allocation4 + $0xf0] sm:$0xff]  ;;  %v818_v41 = vrot.slane %v805_v29, %v3501_v34 }
  0xcd   :  { %677 = vmatprep.subr.mxu0 %v293_v49  ;;  %613 = vmatpush1.msra.mxu1 %v254_v42  ;;  %v207_v49 = vld [vmem:[#allocation4 + $0x98] sm:$0xff]  ;;  %v942_v42 = vld [vmem:[#allocation10 + $0x38] sm:$0xff] }
  0xce   :  { %678 = vmatpush1.msra.mxu0 %v292_v50  ;;  %614 = vmatprep.subr.mxu1 %v243_v43  ;;  %v206_v50 = vld [vmem:[#allocation4 + $0x90] sm:$0xff] }
  0xcf   :  { %679 = vmatprep.subr.mxu0 %v281_v51  ;;  %615 = vmatpush1.msra.mxu1 %v242_v44  ;;  %v195_v51 = vld [vmem:[#allocation4 + $0x38] sm:$0xff] }
  0xd0   :  { %680 = vmatpush1.msra.mxu0 %v280_v52  ;;  %616 = vmatprep.subr.mxu1 %v231_v45  ;;  %v194_v52 = vld [vmem:[#allocation4 + $0x30] sm:$0xff]  ;;  %v941_v44 = vld [vmem:[#allocation10 + $0x30] sm:$0xff]  ;;  %v3509_v45 = vsub.s32 2, %v3486_v25 }
  0xd1   :  { %681 = vmatprep.subr.mxu0 %v269_v53  ;;  %617 = vmatpush1.msra.mxu1 %v230_v46  ;;  %v379_v53 = vld [vmem:[#allocation4 + $0x5f8] sm:$0xff] }
  0xd2   :  { %682 = vmatpush1.msra.mxu0 %v268_v54  ;;  %618 = vmatprep.subr.mxu1 %v219_v47  ;;  %v378_v54 = vld [vmem:[#allocation4 + $0x5f0] sm:$0xff] }
  0xd3   :  { %683 = vmatprep.subr.mxu0 %v257_v55  ;;  %619 = vmatpush1.msra.mxu1 %v218_v48  ;;  %v367_v55 = vld [vmem:[#allocation4 + $0x598] sm:$0xff]  ;;  %v939_v48 = vld [vmem:[#allocation10 + $0x20] sm:$0xff] }
  0xd4   :  { %684 = vmatpush1.msra.mxu0 %v256_v56  ;;  %620 = vmatprep.subr.mxu1 %v207_v49  ;;  %v366_v56 = vld [vmem:[#allocation4 + $0x590] sm:$0xff]  ;;  %v814_v49 = vrot.slane %v805_v29, %v3509_v45 }
  0xd5   :  { %685 = vmatprep.subr.mxu0 %v245_v57  ;;  %621 = vmatpush1.msra.mxu1 %v206_v50  ;;  %v355_v57 = vld [vmem:[#allocation4 + $0x538] sm:$0xff] }
  0xd6   :  { %686 = vmatpush1.msra.mxu0 %v244_v58  ;;  %622 = vmatprep.subr.mxu1 %v195_v51  ;;  %v354_v58 = vld [vmem:[#allocation4 + $0x530] sm:$0xff]  ;;  %v938_v51 = vld [vmem:[#allocation10 + $0x18] sm:$0xff] }
  0xd7   :  { %687 = vmatprep.subr.mxu0 %v233_v59  ;;  %623 = vmatpush1.msra.mxu1 %v194_v52  ;;  %v343_v59 = vld [vmem:[#allocation4 + $0x4d8] sm:$0xff] }
  0xd8   :  { %688 = vmatpush1.msra.mxu0 %v232_v60  ;;  %657 = vmatmul.mubr.f32.vlgmr.msra.gmra.mxu1 %v3456_v61  ;;  %v342_v60 = vld [vmem:[#allocation4 + $0x4d0] sm:$0xff] }
  0xd9   :  { %689 = vmatprep.subr.mxu0 %v221_v62  ;;  %734 = vmatprep.subr.mxu1 %v379_v53  ;;  %v331_v62 = vld [vmem:[#allocation4 + $0x478] sm:$0xff] }
  0xda   :  { %690 = vmatpush1.msra.mxu0 %v220_v63  ;;  %735 = vmatpush1.msra.mxu1 %v378_v54  ;;  %v330_v63 = vld [vmem:[#allocation4 + $0x470] sm:$0xff] }
  0xdb   :  { %691 = vmatprep.subr.mxu0 %v209_v1  ;;  %798 = vmatprep.mubr.f32.mxu1 %v3319_v0  ;;  %v319_v1 = vld [vmem:[#allocation4 + $0x418] sm:$0xff] }
  0xdc   :  { %692 = vmatpush1.msra.mxu0 %v208_v2  ;;  %736 = vmatprep.subr.mxu1 %v367_v55  ;;  %v318_v2 = vld [vmem:[#allocation4 + $0x410] sm:$0xff]  ;;  %v1324_v55 = vsub.s32 1, %v3486_v25  ;;  %v2441_v25 = vld [vmem:[%s3794_s7 + $0x1] ss:$0 sm:$0xff] }
  0xdd   :  { %693 = vmatprep.subr.mxu0 %v197_v3  ;;  %737 = vmatpush1.msra.mxu1 %v366_v56  ;;  %v307_v3 = vld [vmem:[#allocation4 + $0x3b8] sm:$0xff] }
  0xde   :  { %694 = vmatpush1.msra.mxu0 %v196_v4  ;;  %738 = vmatprep.subr.mxu1 %v355_v57  ;;  %v306_v4 = vld [vmem:[#allocation4 + $0x3b0] sm:$0xff]  ;;  %v3518_v57 = vld [vmem:[#allocation7 + $0x4] sm:$0xf] }
  0xdf   :  { %728 = vmatmul.mubr.f32.vlgmr.msra.gmra.mxu0 %v3456_v61  ;;  %2638 = vmatprep.subr.mxu0 %v3319_v0  ;;  %v948_v27 = vld [vmem:[#allocation10 + $0x68] sm:$0xff] }
  0xe0   :  { %2639 = vmatpush3.msra.mxu0 %v856_v5  ;;  %2670 = vmatprep.mubr.msk.f32.mxu0 %vm3320_vm0, %v3319_v0  ;;  %v295_v5 = vld [vmem:[#allocation4 + $0x358] sm:$0xff] }
  0xe1   :  { %2640 = vmatprep.subr.mxu0 %v3319_v0  ;;  %739 = vmatpush1.msra.mxu1 %v354_v58  ;;  %v944_v35 = vld [vmem:[#allocation10 + $0x48] sm:$0xff] }
  0xe2   :  { %2641 = vmatpush3.msra.mxu0 %v855_v6  ;;  %740 = vmatprep.subr.mxu1 %v343_v59  ;;  %v294_v6 = vld [vmem:[#allocation4 + $0x350] sm:$0xff]  ;;  %v1325_v59 = vrot.slane %v3518_v57, %v1324_v55 }
  0xe3   :  { %2642 = vmatprep.subr.mxu0 %v3319_v0  ;;  %741 = vmatpush1.msra.mxu1 %v342_v60  ;;  %v940_v47 = vld [vmem:[#allocation10 + $0x28] sm:$0xff] }
  0xe4   :  { %2643 = vmatpush3.msra.mxu0 %v854_v7  ;;  %742 = vmatprep.subr.mxu1 %v331_v62  ;;  %v283_v7 = vld [vmem:[#allocation4 + $0x2f8] sm:$0xff] }
  0xe5   :  { %2644 = vmatprep.subr.mxu0 %v3319_v0  ;;  %743 = vmatpush1.msra.mxu1 %v330_v63 }
  0xe6   :  { %2645 = vmatpush3.msra.mxu0 %v853_v8  ;;  %744 = vmatprep.subr.mxu1 %v319_v1  ;;  %v282_v8 = vld [vmem:[#allocation4 + $0x2f0] sm:$0xff] }
  0xe7   :  { %2646 = vmatprep.subr.mxu0 %v3319_v0  ;;  %745 = vmatpush1.msra.mxu1 %v318_v2 }
  0xe8   :  { %2647 = vmatpush3.msra.mxu0 %v852_v9  ;;  %746 = vmatprep.subr.mxu1 %v307_v3  ;;  %v271_v9 = vld [vmem:[#allocation4 + $0x298] sm:$0xff] }
  0xe9   :  { %2648 = vmatprep.subr.mxu0 %v3319_v0  ;;  %747 = vmatpush1.msra.mxu1 %v306_v4 }
  0xea   :  { %2649 = vmatpush3.msra.mxu0 %v851_v10  ;;  %748 = vmatprep.subr.mxu1 %v295_v5  ;;  %v270_v10 = vld [vmem:[#allocation4 + $0x290] sm:$0xff] }
  0xeb   :  { %2650 = vmatprep.subr.mxu0 %v3319_v0  ;;  %749 = vmatpush1.msra.mxu1 %v294_v6 }
  0xec   :  { %2651 = vmatpush3.msra.mxu0 %v850_v11  ;;  %750 = vmatprep.subr.mxu1 %v283_v7  ;;  %v259_v11 = vld [vmem:[#allocation4 + $0x238] sm:$0xff] }
  0xed   :  { %2652 = vmatprep.subr.mxu0 %v3319_v0  ;;  %751 = vmatpush1.msra.mxu1 %v282_v8  ;;  %v937_v7 = vld [vmem:[#allocation10 + $0x10] sm:$0xff]  ;;  %v936_v8 = vld [vmem:[#allocation10 + $0x8] sm:$0xff] }
  0xee   :  { %2653 = vmatpush3.msra.mxu0 %v849_v12  ;;  %752 = vmatprep.subr.mxu1 %v271_v9  ;;  %v258_v12 = vld [vmem:[#allocation4 + $0x230] sm:$0xff] }
  0xef   :  { %2654 = vmatprep.subr.mxu0 %v3319_v0  ;;  %753 = vmatpush1.msra.mxu1 %v270_v10  ;;  %v935_v9 = vld [vmem:[#allocation10] sm:$0xff]  ;;  %v1044_v10 = vld [vmem:[#allocation16 + $0x78] sm:$0xff] }
  0xf0   :  { %2655 = vmatpush3.msra.mxu0 %v848_v13  ;;  %v247_v13 = vld [vmem:[#allocation4 + $0x1d8] sm:$0xff]  ;;  %754 = vmatprep.subr.mxu1 %v259_v11 }
  0xf1   :  { %2656 = vmatprep.subr.mxu0 %v3319_v0  ;;  %755 = vmatpush1.msra.mxu1 %v258_v12  ;;  %v1043_v11 = vld [vmem:[#allocation16 + $0x70] sm:$0xff]  ;;  %v1042_v12 = vld [vmem:[#allocation16 + $0x68] sm:$0xff] }
  0xf2   :  { %2657 = vmatpush3.msra.mxu0 %v847_v14  ;;  %v246_v14 = vld [vmem:[#allocation4 + $0x1d0] sm:$0xff]  ;;  %756 = vmatprep.subr.mxu1 %v247_v13 }
  0xf3   :  { %2658 = vmatprep.subr.mxu0 %v3319_v0  ;;  %757 = vmatpush1.msra.mxu1 %v246_v14  ;;  %v1041_v13 = vld [vmem:[#allocation16 + $0x60] sm:$0xff]  ;;  %v1040_v14 = vld [vmem:[#allocation16 + $0x58] sm:$0xff] }
  0xf4   :  { %2659 = vmatpush3.msra.mxu0 %v846_v15  ;;  %v235_v15 = vld [vmem:[#allocation4 + $0x178] sm:$0xff] }
  0xf5   :  { %2660 = vmatprep.subr.mxu0 %v3319_v0  ;;  %758 = vmatprep.subr.mxu1 %v235_v15  ;;  %v1039_v15 = vld [vmem:[#allocation16 + $0x50] sm:$0xff] }
  0xf6   :  { %2661 = vmatpush3.msra.mxu0 %v845_v16  ;;  %v234_v16 = vld [vmem:[#allocation4 + $0x170] sm:$0xff] }
  0xf7   :  { %2662 = vmatprep.subr.mxu0 %v3319_v0  ;;  %759 = vmatpush1.msra.mxu1 %v234_v16  ;;  %v1038_v16 = vld [vmem:[#allocation16 + $0x48] sm:$0xff] }
  0xf8   :  { %2663 = vmatpush3.msra.mxu0 %v844_v17  ;;  %v223_v17 = vld [vmem:[#allocation4 + $0x118] sm:$0xff] }
  0xf9   :  { %2664 = vmatprep.subr.mxu0 %v3319_v0  ;;  %760 = vmatprep.subr.mxu1 %v223_v17  ;;  %v1037_v17 = vld [vmem:[#allocation16 + $0x40] sm:$0xff] }
  0xfa   :  { %2665 = vmatpush3.msra.mxu0 %v843_v18  ;;  %v222_v18 = vld [vmem:[#allocation4 + $0x110] sm:$0xff] }
  0xfb   :  { %2666 = vmatprep.subr.mxu0 %v3319_v0  ;;  %761 = vmatpush1.msra.mxu1 %v222_v18  ;;  %v1036_v18 = vld [vmem:[#allocation16 + $0x38] sm:$0xff] }
  0xfc   :  { %2667 = vmatpush3.msra.mxu0 %v842_v19  ;;  %v211_v19 = vld [vmem:[#allocation4 + $0xb8] sm:$0xff] }
  0xfd   :  { %2668 = vmatprep.subr.mxu0 %v3319_v0  ;;  %762 = vmatprep.subr.mxu1 %v211_v19  ;;  %v1035_v19 = vld [vmem:[#allocation16 + $0x30] sm:$0xff] }
  0xfe   :  { %2669 = vmatpush3.msra.mxu0 %v841_v20  ;;  %v210_v20 = vld [vmem:[#allocation4 + $0xb0] sm:$0xff] }
  0xff   :  { %2708 = vmatprep.subr.mxu0 %v3319_v0  ;;  %763 = vmatpush1.msra.mxu1 %v210_v20  ;;  %v1034_v20 = vld [vmem:[#allocation16 + $0x28] sm:$0xff] }
 0x100   :  { %764 = vmatprep.subr.mxu1 %v199_v22  ;;  %v1032_v22 = vld [vmem:[#allocation16 + $0x18] sm:$0xff] }
 0x101   :  { %765 = vmatpush1.msra.mxu1 %v198_v23  ;;  %v1031_v23 = vld [vmem:[#allocation16 + $0x10] sm:$0xff] }
 0x102   :  { %799 = vmatmul.mubr.f32.vlgmr.msra.gmra.mxu1 %v3456_v61  ;;  %2673 = vmatprep.subr.mxu1 %v3319_v0  ;;  %v946_v61 = vld [vmem:[#allocation10 + $0x58] sm:$0xff] }
 0x103   :  { %2674 = vmatpush3.msra.mxu1 %v950_v24  ;;  %2705 = vmatprep.mubr.msk.f32.mxu1 %vm3320_vm0, %v3319_v0 }
 0x104   :  { %2675 = vmatprep.subr.mxu1 %v3319_v0 }
 0x105   :  { %2676 = vmatpush3.msra.mxu1 %v949_v26 }
 0x106   :  { %2677 = vmatprep.subr.mxu1 %v3319_v0 }
 0x107   :  { %2678 = vmatpush3.msra.mxu1 %v948_v27  ;;  %v2427_v27 = vld [vmem:[%s3792_s5] ss:$0 sm:$0xff] }
 0x108   :  { %2679 = vmatprep.subr.mxu1 %v3319_v0 }
 0x109   :  { %2680 = vmatpush3.msra.mxu1 %v947_v30 }
 0x10a   :  { %2681 = vmatprep.subr.mxu1 %v3319_v0 }
 0x10b   :  { %2682 = vmatpush3.msra.mxu1 %v946_v61 }
 0x10c   :  { %2683 = vmatprep.subr.mxu1 %v3319_v0 }
 0x10d   :  { %2684 = vmatpush3.msra.mxu1 %v945_v32  ;;  %v1030_v32 = vld [vmem:[#allocation16 + $0x8] sm:$0xff] }
 0x10e   :  { %2685 = vmatprep.subr.mxu1 %v3319_v0 }
 0x10f   :  { %2686 = vmatpush3.msra.mxu1 %v944_v35  ;;  %v1138_v35 = vld [vmem:[#allocation15 + $0x78] sm:$0xff] }
 0x110   :  { %2687 = vmatprep.subr.mxu1 %v3319_v0 }
 0x111   :  { %2688 = vmatpush3.msra.mxu1 %v943_v38  ;;  %v1135_v38 = vld [vmem:[#allocation15 + $0x60] sm:$0xff] }
 0x112   :  { %2689 = vmatprep.subr.mxu1 %v3319_v0 }
 0x113   :  { %2690 = vmatpush3.msra.mxu1 %v942_v42 }
 0x114   :  { %2691 = vmatprep.subr.mxu1 %v3319_v0 }
 0x115   :  { %2692 = vmatpush3.msra.mxu1 %v941_v44 }
 0x116   :  { %2693 = vmatprep.subr.mxu1 %v3319_v0 }
 0x117   :  { %2694 = vmatpush3.msra.mxu1 %v940_v47  ;;  %v2428_v47 = vld [vmem:[%s3794_s7] ss:$0 sm:$0xff] }
 0x118   :  { %2695 = vmatprep.subr.mxu1 %v3319_v0 }
 0x119   :  { %2696 = vmatpush3.msra.mxu1 %v939_v48 }
 0x11a   :  { %2697 = vmatprep.subr.mxu1 %v3319_v0 }
 0x11b   :  { %2698 = vmatpush3.msra.mxu1 %v938_v51 }
 0x11c   :  { %2699 = vmatprep.subr.mxu1 %v3319_v0 }
 0x11d   :  { %2700 = vmatpush3.msra.mxu1 %v937_v7  ;;  %v1225_v7 = vld [vmem:[#allocation15 + $0xb0] sm:$0xff] }
 0x11e   :  { %2701 = vmatprep.subr.mxu1 %v3319_v0 }
 0x11f   :  { %2702 = vmatpush3.msra.mxu1 %v936_v8  ;;  %v1128_v8 = vld [vmem:[#allocation15 + $0x28] sm:$0xff] }
 0x120   :  { %2703 = vmatprep.subr.mxu1 %v3319_v0 }
 0x121   :  { %2704 = vmatpush3.msra.mxu1 %v935_v9  ;;  %v1224_v9 = vld [vmem:[#allocation15 + $0xa8] sm:$0xff] }
 0x122   :  { %2743 = vmatprep.subr.mxu1 %v3319_v0 }
 0x15f   :  { %v446_v33 = vpop.f32.mrf.mxu0 }
 0x160   :  { %v822_v36 = vadd.f32 %v810_v31, %v446_v33  ;;  %v516_v40 = vpop.f32.mrf.mxu1  ;;  %v1029_v33 = vld [vmem:[#allocation16] sm:$0xff] }
 0x161   :  { %v448_v37 = vpop.f32.mrf.mxu0  ;;  %v823_v52 = vadd.f32 %v814_v49, %v516_v40  ;;  %v1133_v40 = vld [vmem:[#allocation15 + $0x50] sm:$0xff] }
 0x162   :  { %v2425_v39 = vmul.f32 -1.442695, %v822_v36  ;;  %v518_v43 = vpop.f32.mrf.mxu1  ;;  %v1137_v36 = vld [vmem:[#allocation15 + $0x70] sm:$0xff]  ;;  %v1136_v37 = vld [vmem:[#allocation15 + $0x68] sm:$0xff] }
 0x163   :  { %v824_v46 = vadd.f32 %v818_v41, %v518_v43  ;;  %v1132_v41 = vld [vmem:[#allocation15 + $0x48] sm:$0xff] }
 0x164   :  { %3043 = vpow2.f32 %v2425_v39  ;;  %v1134_v39 = vld [vmem:[#allocation15 + $0x58] sm:$0xff] }
 0x165   :  { %v2426_v50 = vmul.f32 -1.442695, %v824_v46 }
 0x167   :  { %3045 = vpow2.f32 %v2426_v50  ;;  %v1234_v50 = vld [vmem:[#allocation15 + $0xf8] sm:$0xff] }
 0x168   :  { %3047 = vtanh.f32 %v823_v52  ;;  %v1233_v52 = vld [vmem:[#allocation15 + $0xf0] sm:$0xff] }
 0x171   :  { %v3044_v53 = vpop.eup %3043 }
 0x172   :  { %v828_v54 = vadd.f32 1.0, %v3044_v53  ;;  %v1232_v53 = vld [vmem:[#allocation15 + $0xe8] sm:$0xff] }
 0x174   :  { %3049 = vrcp.f32 %v828_v54  ;;  %v3046_v56 = vpop.eup %3045  ;;  %v1231_v54 = vld [vmem:[#allocation15 + $0xe0] sm:$0xff] }
 0x175   :  { %v835_v58 = vadd.f32 1.0, %v3046_v56  ;;  %v3048_v60 = vpop.eup %3047  ;;  %v1230_v56 = vld [vmem:[#allocation15 + $0xd8] sm:$0xff] }
 0x177   :  { %3051 = vrcp.f32 %v835_v58  ;;  %v1229_v58 = vld [vmem:[#allocation15 + $0xd0] sm:$0xff] }
 0x17f   :  { %v3523_v62 = vpop.f32.mrf.mxu0 }
 0x181   :  { %v3050_v63 = vpop.eup %3049  ;;  %v589_v2 = vpop.f32.mrf.mxu0 }
 0x182   :  { %v3525_v1 = vmul.f32 %v3050_v63, %v3048_v60  ;;  %v3527_v3 = vadd.f32 %v1325_v59, %v589_v2  ;;  %v1228_v59 = vld [vmem:[#allocation15 + $0xc8] sm:$0xff]  ;;  %v1131_v60 = vld [vmem:[#allocation15 + $0x40] sm:$0xff]  ;;  %v1130_v2 = vld [vmem:[#allocation15 + $0x38] sm:$0xff] }
 0x183   :  { %v1227_v63 = vld [vmem:[#allocation15 + $0xc0] sm:$0xff] }
 0x184   :  { %3053 = vtanh.f32 %v3525_v1  ;;  %v3052_v4 = vpop.eup %3051 }
 0x191   :  { %v3054_v5 = vpop.eup %3053 }
 0x192   :  { %v3530_v6 = vmul.f32 %v3054_v5, %v3052_v4  ;;  %v1226_v4 = vld [vmem:[#allocation15 + $0xb8] sm:$0xff]  ;;  %v1129_v5 = vld [vmem:[#allocation15 + $0x30] sm:$0xff] }
 0x194   :  { %2671 = vmatmul.mubr.f32.vlgmr.msra.gmra.mxu0 %v3530_v6 }
 0x195   :  { %2740 = vmatprep.mubr.msk.f32.mxu0 %vm3320_vm0, %v3319_v0  ;;  %2709 = vmatpush3.msra.mxu0 %v1044_v10  ;;  %v1127_v10 = vld [vmem:[#allocation15 + $0x20] sm:$0xff] }
 0x196   :  { %2710 = vmatprep.subr.mxu0 %v3319_v0 }
 0x197   :  { %2711 = vmatpush3.msra.mxu0 %v1043_v11  ;;  %v1223_v11 = vld [vmem:[#allocation15 + $0xa0] sm:$0xff] }
 0x198   :  { %2712 = vmatprep.subr.mxu0 %v3319_v0  ;;  %v3570_v42 = vpop.f32.mrf.mxu1 }
 0x199   :  { %2713 = vmatpush3.msra.mxu0 %v1042_v12  ;;  %v1126_v12 = vld [vmem:[#allocation15 + $0x18] sm:$0xff] }
 0x19a   :  { %2714 = vmatprep.subr.mxu0 %v3319_v0  ;;  %v3572_v43 = vpop.f32.mrf.mxu1 }
 0x19b   :  { %2715 = vmatpush3.msra.mxu0 %v1041_v13  ;;  %v1222_v13 = vld [vmem:[#allocation15 + $0x98] sm:$0xff] }
 0x19c   :  { %2716 = vmatprep.subr.mxu0 %v3319_v0 }
 0x19d   :  { %2717 = vmatpush3.msra.mxu0 %v1040_v14  ;;  %v1125_v14 = vld [vmem:[#allocation15 + $0x10] sm:$0xff] }
 0x19e   :  { %2718 = vmatprep.subr.mxu0 %v3319_v0 }
 0x19f   :  { %2719 = vmatpush3.msra.mxu0 %v1039_v15  ;;  %v3552_v24 = vpop.f32.mrf.mxu0  ;;  %v1221_v15 = vld [vmem:[#allocation15 + $0x90] sm:$0xff] }
 0x1a0   :  { %2720 = vmatprep.subr.mxu0 %v3319_v0 }
 0x1a1   :  { %2721 = vmatpush3.msra.mxu0 %v1038_v16  ;;  %v3554_v26 = vpop.f32.mrf.mxu0  ;;  %v1124_v16 = vld [vmem:[#allocation15 + $0x8] sm:$0xff] }
 0x1a2   :  { %2722 = vmatprep.subr.mxu0 %v3319_v0 }
 0x1a3   :  { %2723 = vmatpush3.msra.mxu0 %v1037_v17  ;;  %v1220_v17 = vld [vmem:[#allocation15 + $0x88] sm:$0xff] }
 0x1a4   :  { %2724 = vmatprep.subr.mxu0 %v3319_v0 }
 0x1a5   :  { %2725 = vmatpush3.msra.mxu0 %v1036_v18  ;;  %v1123_v18 = vld [vmem:[#allocation15] sm:$0xff] }
 0x1a6   :  { %2726 = vmatprep.subr.mxu0 %v3319_v0 }
 0x1a7   :  { %2727 = vmatpush3.msra.mxu0 %v1035_v19  ;;  %v1219_v19 = vld [vmem:[#allocation15 + $0x80] sm:$0xff] }
 0x1a8   :  { %2728 = vmatprep.subr.mxu0 %v3319_v0 }
 0x1a9   :  { %2729 = vmatpush3.msra.mxu0 %v1034_v20  ;;  %v1404_v20 = vld [vmem:[#allocation6 + $0x3e8] sm:$0xff] }
 0x1aa   :  { %2730 = vmatprep.subr.mxu0 %v3319_v0 }
 0x1ab   :  { %2731 = vmatpush3.msra.mxu0 %v1033_v21  ;;  %v1406_v21 = vld [vmem:[#allocation6 + $0x3f8] sm:$0xff] }
 0x1ac   :  { %2732 = vmatprep.subr.mxu0 %v3319_v0 }
 0x1ad   :  { %2733 = vmatpush3.msra.mxu0 %v1032_v22  ;;  %v2429_v22 = vld [vmem:[%s3802_s15] ss:$0 sm:$0xff] }
 0x1ae   :  { %2734 = vmatprep.subr.mxu0 %v3319_v0 }
 0x1af   :  { %2735 = vmatpush3.msra.mxu0 %v1031_v23 }
 0x1b0   :  { %2736 = vmatprep.subr.mxu0 %v3319_v0 }
 0x1b1   :  { %2737 = vmatpush3.msra.mxu0 %v1030_v32  ;;  %v1400_v32 = vld [vmem:[#allocation6 + $0x3c8] sm:$0xff] }
 0x1b2   :  { %2738 = vmatprep.subr.mxu0 %v3319_v0 }
 0x1b3   :  { %2739 = vmatpush3.msra.mxu0 %v1029_v33  ;;  %v1402_v33 = vld [vmem:[#allocation6 + $0x3d8] sm:$0xff] }
 0x1b4   :  { %2778 = vmatprep.subr.mxu0 %v3319_v0 }
 0x1c2   :  { %v3574_v44 = vpop.f32.mrf.mxu1 }
 0x1c4   :  { %v3576_v46 = vpop.f32.mrf.mxu1 }
 0x254   :  { %v930_v29 = vpop.f32.mrf.mxu0 }
 0x255   :  { %v931_v30 = vadd.f32 %v2427_v27, %v930_v29 }
 0x256   :  { %v2672_v61 = vpop.f32.mrf.mxu0 }
 0x257   :  { %v934_v31 = vmax.f32 %v931_v30, 0.0  ;;  %v1403_v30 = vld [vmem:[#allocation6 + $0x3e0] sm:$0xff]  ;;  %v1405_v61 = vld [vmem:[#allocation6 + $0x3f0] sm:$0xff] }
 0x259   :  { %2706 = vmatmul.mubr.f32.vlgmr.msra.gmra.mxu1 %v934_v31 }
 0x25a   :  { %2775 = vmatprep.mubr.msk.f32.mxu1 %vm3320_vm0, %v3319_v0  ;;  %2744 = vmatpush3.msra.mxu1 %v1138_v35  ;;  %v1399_v35 = vld [vmem:[#allocation6 + $0x3c0] sm:$0xff] }
 0x25b   :  { %2745 = vmatprep.subr.mxu1 %v3319_v0 }
 0x25c   :  { %2746 = vmatpush3.msra.mxu1 %v1137_v36  ;;  %v1401_v36 = vld [vmem:[#allocation6 + $0x3d0] sm:$0xff] }
 0x25d   :  { %2747 = vmatprep.subr.mxu1 %v3319_v0 }
 0x25e   :  { %2748 = vmatpush3.msra.mxu1 %v1136_v37  ;;  %v1396_v37 = vld [vmem:[#allocation6 + $0x3a8] sm:$0xff] }
 0x25f   :  { %2749 = vmatprep.subr.mxu1 %v3319_v0 }
 0x260   :  { %2750 = vmatpush3.msra.mxu1 %v1135_v38  ;;  %v1398_v38 = vld [vmem:[#allocation6 + $0x3b8] sm:$0xff] }
 0x261   :  { %2751 = vmatprep.subr.mxu1 %v3319_v0 }
 0x262   :  { %2752 = vmatpush3.msra.mxu1 %v1134_v39  ;;  %v1395_v39 = vld [vmem:[#allocation6 + $0x3a0] sm:$0xff] }
 0x263   :  { %2753 = vmatprep.subr.mxu1 %v3319_v0 }
 0x264   :  { %2754 = vmatpush3.msra.mxu1 %v1133_v40  ;;  %v1397_v40 = vld [vmem:[#allocation6 + $0x3b0] sm:$0xff] }
 0x265   :  { %2755 = vmatprep.subr.mxu1 %v3319_v0 }
 0x266   :  { %2756 = vmatpush3.msra.mxu1 %v1132_v41  ;;  %v1392_v41 = vld [vmem:[#allocation6 + $0x388] sm:$0xff] }
 0x267   :  { %2757 = vmatprep.subr.mxu1 %v3319_v0 }
 0x268   :  { %2758 = vmatpush3.msra.mxu1 %v1131_v60  ;;  %v1380_v60 = vld [vmem:[#allocation6 + $0x328] sm:$0xff] }
 0x269   :  { %2759 = vmatprep.subr.mxu1 %v3319_v0 }
 0x26a   :  { %2760 = vmatpush3.msra.mxu1 %v1130_v2  ;;  %v1379_v2 = vld [vmem:[#allocation6 + $0x320] sm:$0xff] }
 0x26b   :  { %2761 = vmatprep.subr.mxu1 %v3319_v0 }
 0x26c   :  { %2762 = vmatpush3.msra.mxu1 %v1129_v5  ;;  %v1376_v5 = vld [vmem:[#allocation6 + $0x308] sm:$0xff] }
 0x26d   :  { %2763 = vmatprep.subr.mxu1 %v3319_v0 }
 0x26e   :  { %2764 = vmatpush3.msra.mxu1 %v1128_v8  ;;  %v1375_v8 = vld [vmem:[#allocation6 + $0x300] sm:$0xff] }
 0x26f   :  { %2765 = vmatprep.subr.mxu1 %v3319_v0 }
 0x270   :  { %2766 = vmatpush3.msra.mxu1 %v1127_v10  ;;  %v1372_v10 = vld [vmem:[#allocation6 + $0x2e8] sm:$0xff] }
 0x271   :  { %2767 = vmatprep.subr.mxu1 %v3319_v0 }
 0x272   :  { %2768 = vmatpush3.msra.mxu1 %v1126_v12  ;;  %v1371_v12 = vld [vmem:[#allocation6 + $0x2e0] sm:$0xff] }
 0x273   :  { %2769 = vmatprep.subr.mxu1 %v3319_v0 }
 0x274   :  { %2770 = vmatpush3.msra.mxu1 %v1125_v14  ;;  %v1368_v14 = vld [vmem:[#allocation6 + $0x2c8] sm:$0xff] }
 0x275   :  { %2771 = vmatprep.subr.mxu1 %v3319_v0 }
 0x276   :  { %2772 = vmatpush3.msra.mxu1 %v1124_v16  ;;  %v1367_v16 = vld [vmem:[#allocation6 + $0x2c0] sm:$0xff] }
 0x277   :  { %2773 = vmatprep.subr.mxu1 %v3319_v0 }
 0x278   :  { %2774 = vmatpush3.msra.mxu1 %v1123_v18  ;;  %v1364_v18 = vld [vmem:[#allocation6 + $0x2a8] sm:$0xff] }
 0x279   :  { %1407 = vmatprep.subr.mxu1 %v1404_v20  ;;  %v1363_v20 = vld [vmem:[#allocation6 + $0x2a0] sm:$0xff] }
 0x319   :  { %v1024_v48 = vpop.f32.mrf.mxu1 }
 0x31a   :  { %v1025_v49 = vadd.f32 %v2428_v47, %v1024_v48  ;;  %v1394_v47 = vld [vmem:[#allocation6 + $0x398] sm:$0xff]  ;;  %v1391_v48 = vld [vmem:[#allocation6 + $0x380] sm:$0xff] }
 0x31b   :  { %v2707_v51 = vpop.f32.mrf.mxu1 }
 0x31c   :  { %1028 = vst [vmem:[%s3803_s16] sm:$0xff] %v1025_v49  ;;  %2741 = vmatmul.mubr.f32.vlgmr.msra.gmra.mxu0 %v1025_v49  ;;  %v1393_v49 = vld [vmem:[#allocation6 + $0x390] sm:$0xff]  ;;  %v1390_v51 = vld [vmem:[#allocation6 + $0x378] sm:$0xff] }
 0x31d   :  { %2779 = vmatpush3.msra.mxu0 %v1234_v50  ;;  %2810 = vmatprep.mubr.msk.f32.mxu0 %vm3320_vm0, %v3319_v0  ;;  %v1388_v50 = vld [vmem:[#allocation6 + $0x368] sm:$0xff] }
 0x31e   :  { %2780 = vmatprep.subr.mxu0 %v3319_v0 }
 0x31f   :  { %2781 = vmatpush3.msra.mxu0 %v1233_v52  ;;  %v1387_v52 = vld [vmem:[#allocation6 + $0x360] sm:$0xff] }
 0x320   :  { %2782 = vmatprep.subr.mxu0 %v3319_v0 }
 0x321   :  { %2783 = vmatpush3.msra.mxu0 %v1232_v53  ;;  %v1389_v53 = vld [vmem:[#allocation6 + $0x370] sm:$0xff] }
 0x322   :  { %2784 = vmatprep.subr.mxu0 %v3319_v0 }
 0x323   :  { %2785 = vmatpush3.msra.mxu0 %v1231_v54  ;;  %v1384_v54 = vld [vmem:[#allocation6 + $0x348] sm:$0xff] }
 0x324   :  { %2786 = vmatprep.subr.mxu0 %v3319_v0 }
 0x325   :  { %2787 = vmatpush3.msra.mxu0 %v1230_v56  ;;  %v1386_v56 = vld [vmem:[#allocation6 + $0x358] sm:$0xff] }
 0x326   :  { %2788 = vmatprep.subr.mxu0 %v3319_v0 }
 0x327   :  { %2789 = vmatpush3.msra.mxu0 %v1229_v58  ;;  %v1383_v58 = vld [vmem:[#allocation6 + $0x340] sm:$0xff] }
 0x328   :  { %2790 = vmatprep.subr.mxu0 %v3319_v0 }
 0x329   :  { %2791 = vmatpush3.msra.mxu0 %v1228_v59  ;;  %v1385_v59 = vld [vmem:[#allocation6 + $0x350] sm:$0xff] }
 0x32a   :  { %2792 = vmatprep.subr.mxu0 %v3319_v0 }
 0x32b   :  { %2793 = vmatpush3.msra.mxu0 %v1227_v63  ;;  %v1382_v63 = vld [vmem:[#allocation6 + $0x338] sm:$0xff] }
 0x32c   :  { %2794 = vmatprep.subr.mxu0 %v3319_v0 }
 0x32d   :  { %2795 = vmatpush3.msra.mxu0 %v1226_v4  ;;  %v1381_v4 = vld [vmem:[#allocation6 + $0x330] sm:$0xff] }
 0x32e   :  { %2796 = vmatprep.subr.mxu0 %v3319_v0 }
 0x32f   :  { %2797 = vmatpush3.msra.mxu0 %v1225_v7  ;;  %v1378_v7 = vld [vmem:[#allocation6 + $0x318] sm:$0xff] }
 0x330   :  { %2798 = vmatprep.subr.mxu0 %v3319_v0 }
 0x331   :  { %2799 = vmatpush3.msra.mxu0 %v1224_v9  ;;  %v1377_v9 = vld [vmem:[#allocation6 + $0x310] sm:$0xff] }
 0x332   :  { %2800 = vmatprep.subr.mxu0 %v3319_v0 }
 0x333   :  { %2801 = vmatpush3.msra.mxu0 %v1223_v11  ;;  %v1374_v11 = vld [vmem:[#allocation6 + $0x2f8] sm:$0xff] }
 0x334   :  { %2802 = vmatprep.subr.mxu0 %v3319_v0 }
 0x335   :  { %2803 = vmatpush3.msra.mxu0 %v1222_v13  ;;  %v1373_v13 = vld [vmem:[#allocation6 + $0x2f0] sm:$0xff] }
 0x336   :  { %2804 = vmatprep.subr.mxu0 %v3319_v0 }
 0x337   :  { %2805 = vmatpush3.msra.mxu0 %v1221_v15  ;;  %v1370_v15 = vld [vmem:[#allocation6 + $0x2d8] sm:$0xff] }
 0x338   :  { %2806 = vmatprep.subr.mxu0 %v3319_v0 }
 0x339   :  { %2807 = vmatpush3.msra.mxu0 %v1220_v17  ;;  %v1369_v17 = vld [vmem:[#allocation6 + $0x2d0] sm:$0xff] }
 0x33a   :  { %2808 = vmatprep.subr.mxu0 %v3319_v0 }
 0x33b   :  { %2809 = vmatpush3.msra.mxu0 %v1219_v19  ;;  %v1366_v19 = vld [vmem:[#allocation6 + $0x2b8] sm:$0xff] }
 0x33c   :  { %1478 = vmatprep.subr.mxu0 %v1406_v21  ;;  %v1365_v21 = vld [vmem:[#allocation6 + $0x2b0] sm:$0xff] }
 0x3dc   :  { %v1118_v23 = vpop.f32.mrf.mxu0 }
 0x3dd   :  { %v1119_v27 = vadd.f32 %v2429_v22, %v1118_v23  ;;  %v1360_v22 = vld [vmem:[#allocation6 + $0x288] sm:$0xff]  ;;  %v1362_v23 = vld [vmem:[#allocation6 + $0x298] sm:$0xff] }
 0x3de   :  { %v2742_v29 = vpop.f32.mrf.mxu0 }
 0x3df   :  { %3055 = vtanh.f32 %v1119_v27  ;;  %v1359_v27 = vld [vmem:[#allocation6 + $0x280] sm:$0xff]  ;;  %v1361_v29 = vld [vmem:[#allocation6 + $0x290] sm:$0xff] }
 0x3ec   :  { %v3056_v31 = vpop.eup %3055 }
 0x3ed   :  { %2776 = vmatmul.mubr.f32.vlgmr.msra.gmra.mxu1 %v3056_v31  ;;  %2811 = vmatmul.mubr.f32.vlgmr.msra.gmra.mxu0 %v3056_v31  ;;  %v1355_v31 = vld [vmem:[#allocation6 + $0x260] sm:$0xff] }
 0x3ee   :  { %1408 = vmatpush1.msra.mxu1 %v1403_v30  ;;  %1479 = vmatpush1.msra.mxu0 %v1405_v61  ;;  %v1356_v30 = vld [vmem:[#allocation6 + $0x268] sm:$0xff]  ;;  %v1358_v61 = vld [vmem:[#allocation6 + $0x278] sm:$0xff] }
 0x3ef   :  { %1409 = vmatprep.subr.mxu1 %v1400_v32  ;;  %1480 = vmatprep.subr.mxu0 %v1402_v33  ;;  %v1357_v32 = vld [vmem:[#allocation6 + $0x270] sm:$0xff]  ;;  %v1352_v33 = vld [vmem:[#allocation6 + $0x248] sm:$0xff] }
 0x3f0   :  { %1410 = vmatpush1.msra.mxu1 %v1399_v35  ;;  %1481 = vmatpush1.msra.mxu0 %v1401_v36  ;;  %v1354_v35 = vld [vmem:[#allocation6 + $0x258] sm:$0xff]  ;;  %v1351_v36 = vld [vmem:[#allocation6 + $0x240] sm:$0xff] }
 0x3f1   :  { %1411 = vmatprep.subr.mxu1 %v1396_v37  ;;  %1482 = vmatprep.subr.mxu0 %v1398_v38  ;;  %v1353_v37 = vld [vmem:[#allocation6 + $0x250] sm:$0xff]  ;;  %v1348_v38 = vld [vmem:[#allocation6 + $0x228] sm:$0xff] }
 0x3f2   :  { %1412 = vmatpush1.msra.mxu1 %v1395_v39  ;;  %1483 = vmatpush1.msra.mxu0 %v1397_v40  ;;  %v1350_v39 = vld [vmem:[#allocation6 + $0x238] sm:$0xff]  ;;  %v1347_v40 = vld [vmem:[#allocation6 + $0x220] sm:$0xff] }
 0x3f3   :  { %1413 = vmatprep.subr.mxu1 %v1392_v41  ;;  %1484 = vmatprep.subr.mxu0 %v1394_v47  ;;  %v1349_v41 = vld [vmem:[#allocation6 + $0x230] sm:$0xff]  ;;  %v1344_v47 = vld [vmem:[#allocation6 + $0x208] sm:$0xff] }
 0x3f4   :  { %1414 = vmatpush1.msra.mxu1 %v1391_v48  ;;  %1485 = vmatpush1.msra.mxu0 %v1393_v49  ;;  %v1346_v48 = vld [vmem:[#allocation6 + $0x218] sm:$0xff]  ;;  %v1343_v49 = vld [vmem:[#allocation6 + $0x200] sm:$0xff] }
 0x3f5   :  { %1415 = vmatprep.subr.mxu1 %v1388_v50  ;;  %1486 = vmatprep.subr.mxu0 %v1390_v51  ;;  %v1345_v50 = vld [vmem:[#allocation6 + $0x210] sm:$0xff] }
 0x3f6   :  { %1416 = vmatpush1.msra.mxu1 %v1387_v52  ;;  %1487 = vmatpush1.msra.mxu0 %v1389_v53  ;;  %v2430_v52 = vld [vmem:[%s3800_s13] ss:$0 sm:$0xff] }
 0x3f7   :  { %1417 = vmatprep.subr.mxu1 %v1384_v54  ;;  %1488 = vmatprep.subr.mxu0 %v1386_v56 }
 0x3f8   :  { %1418 = vmatpush1.msra.mxu1 %v1383_v58  ;;  %1489 = vmatpush1.msra.mxu0 %v1385_v59 }
 0x3f9   :  { %1419 = vmatprep.subr.mxu1 %v1380_v60  ;;  %1490 = vmatprep.subr.mxu0 %v1382_v63  ;;  %v1687_v60 = vld [vmem:[#allocation13 + $0x78] sm:$0xff]  ;;  %v1686_v63 = vld [vmem:[#allocation13 + $0x70] sm:$0xff] }
 0x3fa   :  { %1420 = vmatpush1.msra.mxu1 %v1379_v2  ;;  %1491 = vmatpush1.msra.mxu0 %v1381_v4  ;;  %v1685_v2 = vld [vmem:[#allocation13 + $0x68] sm:$0xff]  ;;  %v1684_v4 = vld [vmem:[#allocation13 + $0x60] sm:$0xff] }
 0x3fb   :  { %1421 = vmatprep.subr.mxu1 %v1376_v5  ;;  %1492 = vmatprep.subr.mxu0 %v1378_v7  ;;  %v1683_v5 = vld [vmem:[#allocation13 + $0x58] sm:$0xff]  ;;  %v1682_v7 = vld [vmem:[#allocation13 + $0x50] sm:$0xff] }
 0x3fc   :  { %1422 = vmatpush1.msra.mxu1 %v1375_v8  ;;  %1493 = vmatpush1.msra.mxu0 %v1377_v9  ;;  %v1681_v8 = vld [vmem:[#allocation13 + $0x48] sm:$0xff]  ;;  %v1680_v9 = vld [vmem:[#allocation13 + $0x40] sm:$0xff] }
 0x3fd   :  { %1423 = vmatprep.subr.mxu1 %v1372_v10  ;;  %1494 = vmatprep.subr.mxu0 %v1374_v11  ;;  %v1592_v10 = vld [vmem:[#allocation12 + $0x78] sm:$0xff] }
 0x3fe   :  { %1424 = vmatpush1.msra.mxu1 %v1371_v12  ;;  %1495 = vmatpush1.msra.mxu0 %v1373_v13  ;;  %v1679_v11 = vld [vmem:[#allocation13 + $0x38] sm:$0xff]  ;;  %v1591_v12 = vld [vmem:[#allocation12 + $0x70] sm:$0xff] }
 0x3ff   :  { %1425 = vmatprep.subr.mxu1 %v1368_v14  ;;  %1496 = vmatprep.subr.mxu0 %v1370_v15  ;;  %v1678_v13 = vld [vmem:[#allocation13 + $0x30] sm:$0xff]  ;;  %v1590_v14 = vld [vmem:[#allocation12 + $0x68] sm:$0xff] }
 0x400   :  { %1426 = vmatpush1.msra.mxu1 %v1367_v16  ;;  %1497 = vmatpush1.msra.mxu0 %v1369_v17  ;;  %v1677_v15 = vld [vmem:[#allocation13 + $0x28] sm:$0xff]  ;;  %v1589_v16 = vld [vmem:[#allocation12 + $0x60] sm:$0xff] }
 0x401   :  { %1427 = vmatprep.subr.mxu1 %v1364_v18  ;;  %1498 = vmatprep.subr.mxu0 %v1366_v19  ;;  %v1676_v17 = vld [vmem:[#allocation13 + $0x20] sm:$0xff]  ;;  %v1588_v18 = vld [vmem:[#allocation12 + $0x58] sm:$0xff] }
 0x402   :  { %1428 = vmatpush1.msra.mxu1 %v1363_v20  ;;  %1499 = vmatpush1.msra.mxu0 %v1365_v21  ;;  %v1675_v19 = vld [vmem:[#allocation13 + $0x18] sm:$0xff]  ;;  %v1587_v20 = vld [vmem:[#allocation12 + $0x50] sm:$0xff] }
 0x403   :  { %1429 = vmatprep.subr.mxu1 %v1360_v22  ;;  %1500 = vmatprep.subr.mxu0 %v1362_v23  ;;  %v1674_v21 = vld [vmem:[#allocation13 + $0x10] sm:$0xff]  ;;  %v1586_v22 = vld [vmem:[#allocation12 + $0x48] sm:$0xff] }
 0x404   :  { %1430 = vmatpush1.msra.mxu1 %v1359_v27  ;;  %1501 = vmatpush1.msra.mxu0 %v1361_v29  ;;  %v1673_v23 = vld [vmem:[#allocation13 + $0x8] sm:$0xff]  ;;  %v1585_v27 = vld [vmem:[#allocation12 + $0x40] sm:$0xff] }
 0x405   :  { %1431 = vmatprep.subr.mxu1 %v1356_v30  ;;  %1502 = vmatprep.subr.mxu0 %v1358_v61  ;;  %v1672_v29 = vld [vmem:[#allocation13] sm:$0xff]  ;;  %v1584_v30 = vld [vmem:[#allocation12 + $0x38] sm:$0xff]  ;;  %v1583_v61 = vld [vmem:[#allocation12 + $0x30] sm:$0xff] }
 0x406   :  { %1432 = vmatpush1.msra.mxu1 %v1355_v31  ;;  %1503 = vmatpush1.msra.mxu0 %v1357_v32  ;;  %v1582_v31 = vld [vmem:[#allocation12 + $0x28] sm:$0xff]  ;;  %v1581_v32 = vld [vmem:[#allocation12 + $0x20] sm:$0xff] }
 0x407   :  { %1433 = vmatprep.subr.mxu1 %v1352_v33  ;;  %1504 = vmatprep.subr.mxu0 %v1354_v35  ;;  %v1580_v33 = vld [vmem:[#allocation12 + $0x18] sm:$0xff]  ;;  %v1579_v35 = vld [vmem:[#allocation12 + $0x10] sm:$0xff] }
 0x408   :  { %1471 = vmatprep.mubr.f32.mxu1 %v3319_v0  ;;  %1542 = vmatprep.mubr.f32.mxu0 %v3319_v0 }
 0x409   :  { %1434 = vmatpush1.msra.mxu1 %v1351_v36  ;;  %1505 = vmatpush1.msra.mxu0 %v1353_v37  ;;  %v1578_v36 = vld [vmem:[#allocation12 + $0x8] sm:$0xff]  ;;  %v1577_v37 = vld [vmem:[#allocation12] sm:$0xff] }
 0x40a   :  { %1435 = vmatprep.subr.mxu1 %v1348_v38  ;;  %1506 = vmatprep.subr.mxu0 %v1350_v39  ;;  %v1321_v38 = vrot.slane %v3518_v57, %v3494_v28 }
 0x40b   :  { %1436 = vmatpush1.msra.mxu1 %v1347_v40  ;;  %1507 = vmatpush1.msra.mxu0 %v1349_v41 }
 0x40c   :  { %1437 = vmatprep.subr.mxu1 %v1344_v47  ;;  %1508 = vmatprep.subr.mxu0 %v1346_v48  ;;  %v1338_v39 = vadd.f32 %v1321_v38, %v3523_v62  ;;  %v2044_v38 = vld [vmem:[#allocation6 + $0x5c0] sm:$0xff] }
 0x40d   :  { %1438 = vmatpush1.msra.mxu1 %v1343_v49  ;;  %1509 = vmatpush1.msra.mxu0 %v1345_v50 }
 0x40e   :  { %2848 = vmatprep.subr.mxu0 %v3319_v0  ;;  %2813 = vmatprep.subr.mxu1 %v3319_v0 }
 0x4ad   :  { %v1205_v51 = vpop.f32.mrf.mxu1  ;;  %v3619_v53 = vpop.f32.mrf.mxu0 }
 0x4ae   :  { %v1209_v54 = vadd.f32 %v1205_v51, %v3530_v6 }
 0x4af   :  { %v2777_v56 = vpop.f32.mrf.mxu1  ;;  %v2812_v58 = vpop.f32.mrf.mxu0 }
 0x4b0   :  { %v1217_v59 = vadd.f32 %v2430_v52, %v1209_v54  ;;  %v1333_v52 = vrot.slane %v3518_v57, %v3501_v34  ;;  %v1329_v54 = vrot.slane %v3518_v57, %v3509_v45 }
 0x4b2   :  { %1472 = vmatmul.mubr.f32.vlgmr.msra.gmra.mxu1 %v1217_v59  ;;  %1543 = vmatmul.mubr.f32.vlgmr.msra.gmra.mxu0 %v1217_v59  ;;  %v1341_v58 = vadd.f32 %v1333_v52, %v3572_v43  ;;  %v1340_v59 = vadd.f32 %v1329_v54, %v3570_v42  ;;  %v2025_v52 = vld [vmem:[#allocation6 + $0x528] sm:$0xff]  ;;  %v2024_v54 = vld [vmem:[#allocation6 + $0x520] sm:$0xff] }
 0x4b3   :  { %2880 = vmatprep.mubr.msk.f32.mxu0 %vm3320_vm0, %v3319_v0  ;;  %2845 = vmatprep.mubr.msk.f32.mxu1 %vm3320_vm0, %v3319_v0 }
 0x4b4   :  { %2849 = vmatpush3.msra.mxu0 %v1687_v60  ;;  %2814 = vmatpush3.msra.mxu1 %v1592_v10 }
 0x4b5   :  { %2850 = vmatprep.subr.mxu0 %v3319_v0  ;;  %2815 = vmatprep.subr.mxu1 %v3319_v0 }
 0x4b6   :  { %2851 = vmatpush3.msra.mxu0 %v1686_v63  ;;  %2816 = vmatpush3.msra.mxu1 %v1591_v12 }
 0x4b7   :  { %2852 = vmatprep.subr.mxu0 %v3319_v0  ;;  %2817 = vmatprep.subr.mxu1 %v3319_v0 }
 0x4b8   :  { %2853 = vmatpush3.msra.mxu0 %v1685_v2  ;;  %2818 = vmatpush3.msra.mxu1 %v1590_v14 }
 0x4b9   :  { %2854 = vmatprep.subr.mxu0 %v3319_v0  ;;  %2819 = vmatprep.subr.mxu1 %v3319_v0 }
 0x4ba   :  { %2855 = vmatpush3.msra.mxu0 %v1684_v4  ;;  %2820 = vmatpush3.msra.mxu1 %v1589_v16  ;;  %v1782_v16 = vld [vmem:[#allocation9 + $0xf0] sm:$0xff] }
 0x4bb   :  { %2856 = vmatprep.subr.mxu0 %v3319_v0  ;;  %2821 = vmatprep.subr.mxu1 %v3319_v0 }
 0x4bc   :  { %2857 = vmatpush3.msra.mxu0 %v1683_v5  ;;  %2822 = vmatpush3.msra.mxu1 %v1588_v18  ;;  %v1780_v18 = vld [vmem:[#allocation9 + $0xe0] sm:$0xff] }
 0x4bd   :  { %2858 = vmatprep.subr.mxu0 %v3319_v0  ;;  %2823 = vmatprep.subr.mxu1 %v3319_v0 }
 0x4be   :  { %2859 = vmatpush3.msra.mxu0 %v1682_v7  ;;  %2824 = vmatpush3.msra.mxu1 %v1587_v20  ;;  %v1778_v20 = vld [vmem:[#allocation9 + $0xd0] sm:$0xff] }
 0x4bf   :  { %2860 = vmatprep.subr.mxu0 %v3319_v0  ;;  %2825 = vmatprep.subr.mxu1 %v3319_v0 }
 0x4c0   :  { %2861 = vmatpush3.msra.mxu0 %v1681_v8  ;;  %2826 = vmatpush3.msra.mxu1 %v1586_v22  ;;  %v1776_v22 = vld [vmem:[#allocation9 + $0xc0] sm:$0xff] }
 0x4c1   :  { %2862 = vmatprep.subr.mxu0 %v3319_v0  ;;  %2827 = vmatprep.subr.mxu1 %v3319_v0 }
 0x4c2   :  { %2863 = vmatpush3.msra.mxu0 %v1680_v9  ;;  %2828 = vmatpush3.msra.mxu1 %v1585_v27  ;;  %v1774_v27 = vld [vmem:[#allocation9 + $0xb0] sm:$0xff] }
 0x4c3   :  { %2864 = vmatprep.subr.mxu0 %v3319_v0  ;;  %2829 = vmatprep.subr.mxu1 %v3319_v0 }
 0x4c4   :  { %2865 = vmatpush3.msra.mxu0 %v1679_v11  ;;  %2830 = vmatpush3.msra.mxu1 %v1584_v30  ;;  %v1772_v30 = vld [vmem:[#allocation9 + $0xa0] sm:$0xff] }
 0x4c5   :  { %2866 = vmatprep.subr.mxu0 %v3319_v0  ;;  %2831 = vmatprep.subr.mxu1 %v3319_v0 }
 0x4c6   :  { %2867 = vmatpush3.msra.mxu0 %v1678_v13  ;;  %2832 = vmatpush3.msra.mxu1 %v1583_v61  ;;  %v1771_v61 = vld [vmem:[#allocation9 + $0x98] sm:$0xff] }
 0x4c7   :  { %2868 = vmatprep.subr.mxu0 %v3319_v0  ;;  %2833 = vmatprep.subr.mxu1 %v3319_v0 }
 0x4c8   :  { %2869 = vmatpush3.msra.mxu0 %v1677_v15  ;;  %2834 = vmatpush3.msra.mxu1 %v1582_v31  ;;  %v1783_v15 = vld [vmem:[#allocation9 + $0xf8] sm:$0xff]  ;;  %v1770_v31 = vld [vmem:[#allocation9 + $0x90] sm:$0xff] }
 0x4c9   :  { %2870 = vmatprep.subr.mxu0 %v3319_v0  ;;  %2835 = vmatprep.subr.mxu1 %v3319_v0 }
 0x4ca   :  { %2871 = vmatpush3.msra.mxu0 %v1676_v17  ;;  %2836 = vmatpush3.msra.mxu1 %v1581_v32  ;;  %v1781_v17 = vld [vmem:[#allocation9 + $0xe8] sm:$0xff] }
 0x4cb   :  { %2872 = vmatprep.subr.mxu0 %v3319_v0  ;;  %2837 = vmatprep.subr.mxu1 %v3319_v0  ;;  %v1769_v32 = vld [vmem:[#allocation9 + $0x88] sm:$0xff] }
 0x4cc   :  { %2873 = vmatpush3.msra.mxu0 %v1675_v19  ;;  %2838 = vmatpush3.msra.mxu1 %v1580_v33  ;;  %v1779_v19 = vld [vmem:[#allocation9 + $0xd8] sm:$0xff]  ;;  %v1768_v33 = vld [vmem:[#allocation9 + $0x80] sm:$0xff] }
 0x4cd   :  { %2874 = vmatprep.subr.mxu0 %v3319_v0  ;;  %2839 = vmatprep.subr.mxu1 %v3319_v0 }
 0x4ce   :  { %2875 = vmatpush3.msra.mxu0 %v1674_v21  ;;  %2840 = vmatpush3.msra.mxu1 %v1579_v35  ;;  %v1777_v21 = vld [vmem:[#allocation9 + $0xc8] sm:$0xff]  ;;  %v2049_v35 = vld [vmem:[#allocation6 + $0x5e8] sm:$0xff] }
 0x4cf   :  { %2876 = vmatprep.subr.mxu0 %v3319_v0  ;;  %2841 = vmatprep.subr.mxu1 %v3319_v0 }
 0x4d0   :  { %2877 = vmatpush3.msra.mxu0 %v1673_v23  ;;  %2842 = vmatpush3.msra.mxu1 %v1578_v36  ;;  %v1775_v23 = vld [vmem:[#allocation9 + $0xb8] sm:$0xff] }
 0x4d1   :  { %2878 = vmatprep.subr.mxu0 %v3319_v0  ;;  %2843 = vmatprep.subr.mxu1 %v3319_v0  ;;  %v2048_v36 = vld [vmem:[#allocation6 + $0x5e0] sm:$0xff] }
 0x4d2   :  { %2879 = vmatpush3.msra.mxu0 %v1672_v29  ;;  %2844 = vmatpush3.msra.mxu1 %v1577_v37  ;;  %v1773_v29 = vld [vmem:[#allocation9 + $0xa8] sm:$0xff]  ;;  %v2045_v37 = vld [vmem:[#allocation6 + $0x5c8] sm:$0xff] }
 0x4d3   :  { %2918 = vmatprep.subr.mxu0 %v3319_v0  ;;  %2883 = vmatprep.subr.mxu1 %v3319_v0 }
 0x572   :  { %v1473_v40 = vpop.f32.mrf.mxu1  ;;  %v1544_v50 = vpop.f32.mrf.mxu0 }
 0x573   :  { %v1549_v41 = vadd.f32 %v1473_v40, %v1338_v39  ;;  %v1551_v60 = vadd.f32 %v1544_v50, %v1340_v59  ;;  %v2041_v39 = vld [vmem:[#allocation6 + $0x5a8] sm:$0xff]  ;;  %v2040_v40 = vld [vmem:[#allocation6 + $0x5a0] sm:$0xff] }
 0x574   :  { %v1475_v47 = vpop.f32.mrf.mxu1  ;;  %v1546_v56 = vpop.f32.mrf.mxu0  ;;  %v2029_v50 = vld [vmem:[#allocation6 + $0x548] sm:$0xff]  ;;  %v2016_v59 = vld [vmem:[#allocation6 + $0x4e0] sm:$0xff] }
 0x575   :  { %v2433_v48 = vmul.f32 -1.442695, %v1549_v41  ;;  %v1550_v49 = vadd.f32 %v1475_v47, %v3527_v3  ;;  %v1552_v62 = vadd.f32 %v1546_v56, %v1341_v58  ;;  %v2037_v41 = vld [vmem:[#allocation6 + $0x588] sm:$0xff]  ;;  %v2036_v47 = vld [vmem:[#allocation6 + $0x580] sm:$0xff] }
 0x576   :  { %v2021_v56 = vld [vmem:[#allocation6 + $0x508] sm:$0xff]  ;;  %v2020_v58 = vld [vmem:[#allocation6 + $0x500] sm:$0xff] }
 0x577   :  { %3057 = vpow2.f32 %v2433_v48  ;;  %v2434_v51 = vmul.f32 -1.442695, %v1550_v49  ;;  %v2435_v63 = vmul.f32 -1.442695, %v1552_v62  ;;  %v2033_v48 = vld [vmem:[#allocation6 + $0x568] sm:$0xff]  ;;  %v2032_v49 = vld [vmem:[#allocation6 + $0x560] sm:$0xff] }
 0x578   :  { %v2017_v62 = vld [vmem:[#allocation6 + $0x4e8] sm:$0xff] }
 0x579   :  { %3059 = vpow2.f32 %v2434_v51  ;;  %v2028_v51 = vld [vmem:[#allocation6 + $0x540] sm:$0xff] }
 0x57a   :  { %3061 = vtanh.f32 %v1551_v60  ;;  %v2013_v60 = vld [vmem:[#allocation6 + $0x4c8] sm:$0xff] }
 0x57b   :  { %3063 = vpow2.f32 %v2435_v63  ;;  %v2012_v63 = vld [vmem:[#allocation6 + $0x4c0] sm:$0xff] }
 0x584   :  { %v3058_v2 = vpop.eup %3057 }
 0x585   :  { %v1559_v3 = vadd.f32 1.0, %v3058_v2  ;;  %v2009_v2 = vld [vmem:[#allocation6 + $0x4a8] sm:$0xff] }
 0x586   :  { %v3060_v4 = vpop.eup %3059 }
 0x587   :  { %3065 = vrcp.f32 %v1559_v3  ;;  %v1560_v5 = vadd.f32 1.0, %v3060_v4  ;;  %v3062_v7 = vpop.eup %3061  ;;  %v2008_v3 = vld [vmem:[#allocation6 + $0x4a0] sm:$0xff]  ;;  %v2005_v4 = vld [vmem:[#allocation6 + $0x488] sm:$0xff] }
 0x588   :  { %v3064_v8 = vpop.eup %3063 }
 0x589   :  { %3067 = vrcp.f32 %v1560_v5  ;;  %v1569_v11 = vadd.f32 1.0, %v3064_v8  ;;  %v2004_v5 = vld [vmem:[#allocation6 + $0x480] sm:$0xff] }
 0x58a   :  { %v2000_v8 = vld [vmem:[#allocation6 + $0x460] sm:$0xff] }
 0x58b   :  { %3069 = vrcp.f32 %v1569_v11  ;;  %v1992_v11 = vld [vmem:[#allocation6 + $0x420] sm:$0xff] }
 0x594   :  { %v3066_v9 = vpop.eup %3065 }
 0x595   :  { %v1573_v57 = vmul.f32 %v3066_v9, %v3062_v7  ;;  %v2001_v7 = vld [vmem:[#allocation6 + $0x468] sm:$0xff] }
 0x596   :  { %v3068_v10 = vpop.eup %3067  ;;  %v1997_v9 = vld [vmem:[#allocation6 + $0x448] sm:$0xff] }
 0x597   :  { %v1572_v43 = vmul.f32 %v3068_v10, %v3525_v1  ;;  %v1993_v10 = vld [vmem:[#allocation6 + $0x428] sm:$0xff] }
 0x598   :  { %v3070_v42 = vpop.eup %3069 }
 0x599   :  { %v1574_v12 = vadd.f32 %v1573_v57, %v1572_v43  ;;  %v1996_v57 = vld [vmem:[#allocation6 + $0x440] sm:$0xff]  ;;  %v1989_v43 = vld [vmem:[#allocation6 + $0x408] sm:$0xff] }
 0x59b   :  { %3071 = vtanh.f32 %v1574_v12  ;;  %2881 = vmatmul.mubr.f32.vlgmr.msra.gmra.mxu0 %v1574_v12  ;;  %v1879_v12 = vld [vmem:[#allocation10 + $0xf8] sm:$0xff] }
 0x59c   :  { %2950 = vmatprep.mubr.msk.f32.mxu0 %vm3320_vm0, %v3319_v0  ;;  %2919 = vmatpush3.msra.mxu0 %v1879_v12  ;;  %v2010_v12 = vld [vmem:[#allocation6 + $0x4b0] sm:$0xff] }
 0x59d   :  { %2920 = vmatprep.subr.mxu0 %v3319_v0 }
 0x5a8   :  { %v3072_v13 = vpop.eup %3071 }
 0x5a9   :  { %v1576_v14 = vmul.f32 %v3072_v13, %v3070_v42  ;;  %v1988_v42 = vld [vmem:[#allocation6 + $0x400] sm:$0xff] }
 0x5aa   :  { %v1878_v13 = vld [vmem:[#allocation10 + $0xf0] sm:$0xff] }
 0x5ab   :  { %2846 = vmatmul.mubr.f32.vlgmr.msra.gmra.mxu1 %v1576_v14  ;;  %2921 = vmatpush3.msra.mxu0 %v1878_v13  ;;  %v2006_v13 = vld [vmem:[#allocation6 + $0x490] sm:$0xff] }
 0x5ac   :  { %2884 = vmatpush3.msra.mxu1 %v1783_v15  ;;  %2915 = vmatprep.mubr.msk.f32.mxu1 %vm3320_vm0, %v3319_v0  ;;  %v1876_v15 = vld [vmem:[#allocation10 + $0xe0] sm:$0xff] }
 0x5ad   :  { %2885 = vmatprep.subr.mxu1 %v3319_v0  ;;  %2922 = vmatprep.subr.mxu0 %v3319_v0 }
 0x5ae   :  { %2886 = vmatpush3.msra.mxu1 %v1782_v16  ;;  %v1875_v16 = vld [vmem:[#allocation10 + $0xd8] sm:$0xff] }
 0x5af   :  { %2887 = vmatprep.subr.mxu1 %v3319_v0 }
 0x5b0   :  { %2888 = vmatpush3.msra.mxu1 %v1781_v17  ;;  %v1874_v17 = vld [vmem:[#allocation10 + $0xd0] sm:$0xff] }
 0x5b1   :  { %2889 = vmatprep.subr.mxu1 %v3319_v0 }
 0x5b2   :  { %2890 = vmatpush3.msra.mxu1 %v1780_v18  ;;  %v1873_v18 = vld [vmem:[#allocation10 + $0xc8] sm:$0xff] }
 0x5b3   :  { %2891 = vmatprep.subr.mxu1 %v3319_v0 }
 0x5b4   :  { %2892 = vmatpush3.msra.mxu1 %v1779_v19  ;;  %v1872_v19 = vld [vmem:[#allocation10 + $0xc0] sm:$0xff] }
 0x5b5   :  { %2893 = vmatprep.subr.mxu1 %v3319_v0 }
 0x5b6   :  { %2894 = vmatpush3.msra.mxu1 %v1778_v20  ;;  %v1871_v20 = vld [vmem:[#allocation10 + $0xb8] sm:$0xff] }
 0x5b7   :  { %2895 = vmatprep.subr.mxu1 %v3319_v0 }
 0x5b8   :  { %2896 = vmatpush3.msra.mxu1 %v1777_v21  ;;  %v1870_v21 = vld [vmem:[#allocation10 + $0xb0] sm:$0xff] }
 0x5b9   :  { %2897 = vmatprep.subr.mxu1 %v3319_v0 }
 0x5ba   :  { %2898 = vmatpush3.msra.mxu1 %v1776_v22  ;;  %v1869_v22 = vld [vmem:[#allocation10 + $0xa8] sm:$0xff] }
 0x5bb   :  { %2899 = vmatprep.subr.mxu1 %v3319_v0 }
 0x5bc   :  { %2900 = vmatpush3.msra.mxu1 %v1775_v23  ;;  %v1868_v23 = vld [vmem:[#allocation10 + $0xa0] sm:$0xff] }
 0x5bd   :  { %2901 = vmatprep.subr.mxu1 %v3319_v0 }
 0x5be   :  { %2902 = vmatpush3.msra.mxu1 %v1774_v27  ;;  %v1867_v27 = vld [vmem:[#allocation10 + $0x98] sm:$0xff] }
 0x5bf   :  { %2903 = vmatprep.subr.mxu1 %v3319_v0 }
 0x5c0   :  { %2904 = vmatpush3.msra.mxu1 %v1773_v29  ;;  %v1866_v29 = vld [vmem:[#allocation10 + $0x90] sm:$0xff] }
 0x5c1   :  { %2905 = vmatprep.subr.mxu1 %v3319_v0 }
 0x5c2   :  { %2906 = vmatpush3.msra.mxu1 %v1772_v30  ;;  %v1865_v30 = vld [vmem:[#allocation10 + $0x88] sm:$0xff] }
 0x5c3   :  { %2907 = vmatprep.subr.mxu1 %v3319_v0 }
 0x5c4   :  { %2908 = vmatpush3.msra.mxu1 %v1771_v61  ;;  %v1864_v61 = vld [vmem:[#allocation10 + $0x80] sm:$0xff] }
 0x5c5   :  { %2909 = vmatprep.subr.mxu1 %v3319_v0 }
 0x5c6   :  { %2910 = vmatpush3.msra.mxu1 %v1770_v31  ;;  %v2051_v31 = vld [vmem:[#allocation6 + $0x5f8] sm:$0xff] }
 0x5c7   :  { %2911 = vmatprep.subr.mxu1 %v3319_v0 }
 0x5c8   :  { %2912 = vmatpush3.msra.mxu1 %v1769_v32 }
 0x5c9   :  { %2913 = vmatprep.subr.mxu1 %v3319_v0 }
 0x5ca   :  { %2914 = vmatpush3.msra.mxu1 %v1768_v33 }
 0x5cb   :  { %2916 = vmatmul.mubr.f32.vlgmr.msra.gmra.mxu1 %v1576_v14  ;;  %2052 = vmatprep.subr.mxu1 %v2049_v35  ;;  %v1877_v14 = vld [vmem:[#allocation10 + $0xe8] sm:$0xff]  ;;  %v1305_v35 = vadd.f32 %v3619_v53, %v3530_v6 }
 0x5cc   :  { %2053 = vmatpush1.msra.mxu1 %v2048_v36  ;;  %2116 = vmatprep.mubr.f32.mxu1 %v3319_v0  ;;  %v2432_v36 = vld [vmem:[%s3800_s13 + $0x1] ss:$0 sm:$0xff] }
 0x5cd   :  { %2054 = vmatprep.subr.mxu1 %v2045_v37  ;;  %2923 = vmatpush3.msra.mxu0 %v1877_v14  ;;  %v1314_v37 = vadd.f32 %v2432_v36, %v1305_v35  ;;  %v2439_v6 = vld [vmem:[%s3792_s5 + $0x1] ss:$0 sm:$0xff]  ;;  %v2230_v35 = vld [vmem:[#allocation9 + $0x138] sm:$0xff]  ;;  %v2229_v36 = vld [vmem:[#allocation9 + $0x130] sm:$0xff] }
 0x5ce   :  { %2055 = vmatpush1.msra.mxu1 %v2044_v38  ;;  %2924 = vmatprep.subr.mxu0 %v3319_v0  ;;  %v2003_v14 = vld [vmem:[#allocation6 + $0x478] sm:$0xff] }
 0x5cf   :  { %2056 = vmatprep.subr.mxu1 %v2041_v39  ;;  %2925 = vmatpush3.msra.mxu0 %v1876_v15  ;;  %v2436_v39 = vld [vmem:[%s3796_s9] ss:$0 sm:$0xff]  ;;  %v2002_v15 = vld [vmem:[#allocation6 + $0x470] sm:$0xff] }
 0x5d0   :  { %2057 = vmatpush1.msra.mxu1 %v2040_v40  ;;  %2926 = vmatprep.subr.mxu0 %v3319_v0 }
 0x5d1   :  { %2058 = vmatprep.subr.mxu1 %v2037_v41  ;;  %2927 = vmatpush3.msra.mxu0 %v1875_v16  ;;  %v1999_v16 = vld [vmem:[#allocation6 + $0x458] sm:$0xff] }
 0x5d2   :  { %2059 = vmatpush1.msra.mxu1 %v2036_v47  ;;  %2928 = vmatprep.subr.mxu0 %v3319_v0 }
 0x5d3   :  { %2060 = vmatprep.subr.mxu1 %v2033_v48  ;;  %2929 = vmatpush3.msra.mxu0 %v1874_v17  ;;  %v1998_v17 = vld [vmem:[#allocation6 + $0x450] sm:$0xff] }
 0x5d4   :  { %2061 = vmatpush1.msra.mxu1 %v2032_v49  ;;  %2930 = vmatprep.subr.mxu0 %v3319_v0 }
 0x5d5   :  { %2062 = vmatprep.subr.mxu1 %v2029_v50  ;;  %2931 = vmatpush3.msra.mxu0 %v1873_v18  ;;  %v1995_v18 = vld [vmem:[#allocation6 + $0x438] sm:$0xff] }
 0x5d6   :  { %2063 = vmatpush1.msra.mxu1 %v2028_v51  ;;  %2932 = vmatprep.subr.mxu0 %v3319_v0  ;;  %v2050_v51 = vld [vmem:[#allocation6 + $0x5f0] sm:$0xff] }
 0x5d7   :  { %2064 = vmatprep.subr.mxu1 %v2025_v52  ;;  %2933 = vmatpush3.msra.mxu0 %v1872_v19  ;;  %v2047_v52 = vld [vmem:[#allocation6 + $0x5d8] sm:$0xff]  ;;  %v1994_v19 = vld [vmem:[#allocation6 + $0x430] sm:$0xff] }
 0x5d8   :  { %2065 = vmatpush1.msra.mxu1 %v2024_v54  ;;  %2934 = vmatprep.subr.mxu0 %v3319_v0  ;;  %v2046_v54 = vld [vmem:[#allocation6 + $0x5d0] sm:$0xff] }
 0x5d9   :  { %2066 = vmatprep.subr.mxu1 %v2021_v56  ;;  %2935 = vmatpush3.msra.mxu0 %v1871_v20  ;;  %v2043_v56 = vld [vmem:[#allocation6 + $0x5b8] sm:$0xff] }
 0x5da   :  { %2067 = vmatpush1.msra.mxu1 %v2020_v58  ;;  %2936 = vmatprep.subr.mxu0 %v3319_v0  ;;  %v2042_v58 = vld [vmem:[#allocation6 + $0x5b0] sm:$0xff]  ;;  %v1991_v20 = vld [vmem:[#allocation6 + $0x418] sm:$0xff] }
 0x5db   :  { %2068 = vmatprep.subr.mxu1 %v2017_v62  ;;  %2937 = vmatpush3.msra.mxu0 %v1870_v21  ;;  %v2039_v62 = vld [vmem:[#allocation6 + $0x598] sm:$0xff]  ;;  %v1990_v21 = vld [vmem:[#allocation6 + $0x410] sm:$0xff] }
 0x5dc   :  { %2069 = vmatpush1.msra.mxu1 %v2016_v59  ;;  %2938 = vmatprep.subr.mxu0 %v3319_v0  ;;  %v2038_v59 = vld [vmem:[#allocation6 + $0x590] sm:$0xff] }
 0x5dd   :  { %2070 = vmatprep.subr.mxu1 %v2013_v60  ;;  %2939 = vmatpush3.msra.mxu0 %v1869_v22  ;;  %v2035_v60 = vld [vmem:[#allocation6 + $0x578] sm:$0xff]  ;;  %v2238_v22 = vld [vmem:[#allocation9 + $0x178] sm:$0xff] }
 0x5de   :  { %2071 = vmatpush1.msra.mxu1 %v2012_v63  ;;  %2940 = vmatprep.subr.mxu0 %v3319_v0  ;;  %v2034_v63 = vld [vmem:[#allocation6 + $0x570] sm:$0xff] }
 0x5df   :  { %2072 = vmatprep.subr.mxu1 %v2009_v2  ;;  %2941 = vmatpush3.msra.mxu0 %v1868_v23  ;;  %v2031_v2 = vld [vmem:[#allocation6 + $0x558] sm:$0xff] }
 0x5e0   :  { %2073 = vmatpush1.msra.mxu1 %v2008_v3  ;;  %2942 = vmatprep.subr.mxu0 %v3319_v0  ;;  %v2030_v3 = vld [vmem:[#allocation6 + $0x550] sm:$0xff]  ;;  %v2237_v23 = vld [vmem:[#allocation9 + $0x170] sm:$0xff] }
 0x5e1   :  { %2074 = vmatprep.subr.mxu1 %v2005_v4  ;;  %2943 = vmatpush3.msra.mxu0 %v1867_v27  ;;  %v2027_v4 = vld [vmem:[#allocation6 + $0x538] sm:$0xff] }
 0x5e2   :  { %2075 = vmatpush1.msra.mxu1 %v2004_v5  ;;  %2944 = vmatprep.subr.mxu0 %v3319_v0  ;;  %v2026_v5 = vld [vmem:[#allocation6 + $0x530] sm:$0xff] }
 0x5e3   :  { %2076 = vmatprep.subr.mxu1 %v2001_v7  ;;  %2945 = vmatpush3.msra.mxu0 %v1866_v29  ;;  %v2023_v7 = vld [vmem:[#allocation6 + $0x518] sm:$0xff]  ;;  %v2235_v29 = vld [vmem:[#allocation9 + $0x160] sm:$0xff] }
 0x5e4   :  { %2077 = vmatpush1.msra.mxu1 %v2000_v8  ;;  %2946 = vmatprep.subr.mxu0 %v3319_v0  ;;  %v2022_v8 = vld [vmem:[#allocation6 + $0x510] sm:$0xff] }
 0x5e5   :  { %2078 = vmatprep.subr.mxu1 %v1997_v9  ;;  %2947 = vmatpush3.msra.mxu0 %v1865_v30  ;;  %v2019_v9 = vld [vmem:[#allocation6 + $0x4f8] sm:$0xff]  ;;  %v2234_v30 = vld [vmem:[#allocation9 + $0x158] sm:$0xff] }
 0x5e6   :  { %2079 = vmatpush1.msra.mxu1 %v1996_v57  ;;  %2948 = vmatprep.subr.mxu0 %v3319_v0  ;;  %v2018_v57 = vld [vmem:[#allocation6 + $0x4f0] sm:$0xff] }
 0x5e7   :  { %2080 = vmatprep.subr.mxu1 %v1993_v10  ;;  %2949 = vmatpush3.msra.mxu0 %v1864_v61  ;;  %v2015_v10 = vld [vmem:[#allocation6 + $0x4d8] sm:$0xff] }
 0x5e8   :  { %2081 = vmatpush1.msra.mxu1 %v1992_v11  ;;  %2123 = vmatprep.subr.mxu0 %v2051_v31  ;;  %v2014_v11 = vld [vmem:[#allocation6 + $0x4d0] sm:$0xff]  ;;  %v2233_v61 = vld [vmem:[#allocation9 + $0x150] sm:$0xff] }
 0x5e9   :  { %2082 = vmatprep.subr.mxu1 %v1989_v43  ;;  %v2011_v43 = vld [vmem:[#allocation6 + $0x4b8] sm:$0xff] }
 0x5ea   :  { %2083 = vmatpush1.msra.mxu1 %v1988_v42  ;;  %v2007_v42 = vld [vmem:[#allocation6 + $0x498] sm:$0xff] }
 0x5eb   :  { %2953 = vmatprep.subr.mxu1 %v3319_v0  ;;  %v2236_v27 = vld [vmem:[#allocation9 + $0x168] sm:$0xff] }
 0x5ec   :  { %v2232_v31 = vld [vmem:[#allocation9 + $0x148] sm:$0xff] }
 0x65b   :  { %v3705_v32 = vpop.f32.mrf.mxu0 }
 0x65d   :  { %v2882_v33 = vpop.f32.mrf.mxu0 }
 0x65e   :  { %v2231_v33 = vld [vmem:[#allocation9 + $0x140] sm:$0xff] }
 0x66b   :  { %v1659_v38 = vpop.f32.mrf.mxu1 }
 0x66c   :  { %v1663_v40 = vadd.f32 %v1659_v38, %v1314_v37  ;;  %v2228_v37 = vld [vmem:[#allocation9 + $0x128] sm:$0xff]  ;;  %v2227_v38 = vld [vmem:[#allocation9 + $0x120] sm:$0xff] }
 0x66d   :  { %v2847_v41 = vpop.f32.mrf.mxu1 }
 0x66e   :  { %v3715_v47 = vadd.f32 %v2436_v39, %v1663_v40  ;;  %v2226_v39 = vld [vmem:[#allocation9 + $0x118] sm:$0xff]  ;;  %v2225_v40 = vld [vmem:[#allocation9 + $0x110] sm:$0xff]  ;;  %v2224_v41 = vld [vmem:[#allocation9 + $0x108] sm:$0xff] }
 0x670   :  { %2117 = vmatmul.mubr.f32.vlgmr.msra.gmra.mxu1 %v3715_v47 }
 0x671   :  { %2985 = vmatprep.mubr.msk.f32.mxu1 %vm3320_vm0, %v3319_v0  ;;  %2954 = vmatpush3.msra.mxu1 %v2238_v22 }
 0x672   :  { %2955 = vmatprep.subr.mxu1 %v3319_v0 }
 0x673   :  { %2956 = vmatpush3.msra.mxu1 %v2237_v23 }
 0x674   :  { %2957 = vmatprep.subr.mxu1 %v3319_v0 }
 0x675   :  { %2958 = vmatpush3.msra.mxu1 %v2236_v27 }
 0x676   :  { %2959 = vmatprep.subr.mxu1 %v3319_v0 }
 0x677   :  { %2960 = vmatpush3.msra.mxu1 %v2235_v29 }
 0x678   :  { %2961 = vmatprep.subr.mxu1 %v3319_v0 }
 0x679   :  { %2962 = vmatpush3.msra.mxu1 %v2234_v30 }
 0x67a   :  { %2963 = vmatprep.subr.mxu1 %v3319_v0 }
 0x67b   :  { %2964 = vmatpush3.msra.mxu1 %v2233_v61 }
 0x67c   :  { %2965 = vmatprep.subr.mxu1 %v3319_v0 }
 0x67d   :  { %2966 = vmatpush3.msra.mxu1 %v2232_v31 }
 0x67e   :  { %2967 = vmatprep.subr.mxu1 %v3319_v0 }
 0x67f   :  { %2968 = vmatpush3.msra.mxu1 %v2231_v33 }
 0x680   :  { %2969 = vmatprep.subr.mxu1 %v3319_v0 }
 0x681   :  { %2970 = vmatpush3.msra.mxu1 %v2230_v35 }
 0x682   :  { %2971 = vmatprep.subr.mxu1 %v3319_v0 }
 0x683   :  { %2972 = vmatpush3.msra.mxu1 %v2229_v36  ;;  %v2320_v36 = vld [vmem:[#allocation10 + $0x108] sm:$0xff] }
 0x684   :  { %2973 = vmatprep.subr.mxu1 %v3319_v0 }
 0x685   :  { %2974 = vmatpush3.msra.mxu1 %v2228_v37  ;;  %v2319_v37 = vld [vmem:[#allocation10 + $0x100] sm:$0xff] }
 0x686   :  { %2975 = vmatprep.subr.mxu1 %v3319_v0 }
 0x687   :  { %2976 = vmatpush3.msra.mxu1 %v2227_v38  ;;  %v2447_v38 = vld [vmem:[%s3792_s5 + $0x2] ss:$0 sm:$0xff] }
 0x688   :  { %2977 = vmatprep.subr.mxu1 %v3319_v0 }
 0x689   :  { %2978 = vmatpush3.msra.mxu1 %v2226_v39 }
 0x68a   :  { %2979 = vmatprep.subr.mxu1 %v3319_v0 }
 0x68b   :  { %v1858_v53 = vpop.f32.mrf.mxu1  ;;  %2980 = vmatpush3.msra.mxu1 %v2225_v40 }
 0x68c   :  { %v1859_v48 = vadd.f32 %v2439_v6, %v1858_v53  ;;  %2981 = vmatprep.subr.mxu1 %v3319_v0  ;;  %v2334_v6 = vld [vmem:[#allocation10 + $0x178] sm:$0xff]  ;;  %v2333_v53 = vld [vmem:[#allocation10 + $0x170] sm:$0xff] }
 0x68d   :  { %v2917_v49 = vpop.f32.mrf.mxu1  ;;  %2982 = vmatpush3.msra.mxu1 %v2224_v41 }
 0x68e   :  { %v1862_v50 = vmax.f32 %v1859_v48, 0.0  ;;  %2983 = vmatprep.subr.mxu1 %v3319_v0  ;;  %v2332_v48 = vld [vmem:[#allocation10 + $0x168] sm:$0xff]  ;;  %v2331_v49 = vld [vmem:[#allocation10 + $0x160] sm:$0xff] }
 0x690   :  { %2951 = vmatmul.mubr.f32.vlgmr.msra.gmra.mxu0 %v1862_v50  ;;  %v2330_v50 = vld [vmem:[#allocation10 + $0x158] sm:$0xff] }
 0x691   :  { %2124 = vmatpush1.msra.mxu0 %v2050_v51  ;;  %2187 = vmatprep.mubr.f32.mxu0 %v3319_v0  ;;  %v2329_v51 = vld [vmem:[#allocation10 + $0x150] sm:$0xff] }
 0x692   :  { %2125 = vmatprep.subr.mxu0 %v2047_v52  ;;  %v2328_v52 = vld [vmem:[#allocation10 + $0x148] sm:$0xff] }
 0x693   :  { %2126 = vmatpush1.msra.mxu0 %v2046_v54  ;;  %v2327_v54 = vld [vmem:[#allocation10 + $0x140] sm:$0xff] }
 0x694   :  { %2127 = vmatprep.subr.mxu0 %v2043_v56  ;;  %v2326_v56 = vld [vmem:[#allocation10 + $0x138] sm:$0xff] }
 0x695   :  { %2128 = vmatpush1.msra.mxu0 %v2042_v58  ;;  %v2325_v58 = vld [vmem:[#allocation10 + $0x130] sm:$0xff] }
 0x696   :  { %2129 = vmatprep.subr.mxu0 %v2039_v62  ;;  %v2324_v62 = vld [vmem:[#allocation10 + $0x128] sm:$0xff] }
 0x697   :  { %2130 = vmatpush1.msra.mxu0 %v2038_v59  ;;  %v1961_v59 = vld [vmem:[#allocation7 + $0x8] sm:$0xf] }
 0x698   :  { %2131 = vmatprep.subr.mxu0 %v2035_v60  ;;  %v2323_v60 = vld [vmem:[#allocation10 + $0x120] sm:$0xff] }
 0x699   :  { %2132 = vmatpush1.msra.mxu0 %v2034_v63  ;;  %v1970_v63 = vrot.slane %v1961_v59, %v1324_v55  ;;  %v1758_v55 = vadd.f32 %v3705_v32, %v3525_v1  ;;  %v1974_v32 = vrot.slane %v1961_v59, %v3509_v45 }
 0x69a   :  { %2133 = vmatprep.subr.mxu0 %v2031_v2  ;;  %v2322_v2 = vld [vmem:[#allocation10 + $0x118] sm:$0xff] }
 0x69b   :  { %2134 = vmatpush1.msra.mxu0 %v2030_v3 }
 0x69c   :  { %2135 = vmatprep.subr.mxu0 %v2027_v4  ;;  %v1984_v4 = vadd.f32 %v1970_v63, %v3554_v26  ;;  %v2437_v26 = vld [vmem:[%s3798_s11] ss:$0 sm:$0xff] }
 0x69d   :  { %2136 = vmatpush1.msra.mxu0 %v2026_v5 }
 0x69e   :  { %2137 = vmatprep.subr.mxu0 %v2023_v7 }
 0x69f   :  { %2138 = vmatpush1.msra.mxu0 %v2022_v8 }
 0x6a0   :  { %2139 = vmatprep.subr.mxu0 %v2019_v9 }
 0x6a1   :  { %2140 = vmatpush1.msra.mxu0 %v2018_v57 }
 0x6a2   :  { %2141 = vmatprep.subr.mxu0 %v2015_v10  ;;  %v1966_v10 = vrot.slane %v1961_v59, %v3494_v28 }
 0x6a3   :  { %2142 = vmatpush1.msra.mxu0 %v2014_v11 }
 0x6a4   :  { %2143 = vmatprep.subr.mxu0 %v2011_v43 }
 0x6a5   :  { %2144 = vmatpush1.msra.mxu0 %v2010_v12 }
 0x6a6   :  { %2145 = vmatprep.subr.mxu0 %v2007_v42  ;;  %v1766_v42 = vadd.f32 %v2437_v26, %v1758_v55 }
 0x6a7   :  { %2146 = vmatpush1.msra.mxu0 %v2006_v13 }
 0x6a8   :  { %2147 = vmatprep.subr.mxu0 %v2003_v14  ;;  %v1983_v14 = vadd.f32 %v1966_v10, %v3552_v24 }
 0x6a9   :  { %2148 = vmatpush1.msra.mxu0 %v2002_v15 }
 0x6aa   :  { %2149 = vmatprep.subr.mxu0 %v1999_v16 }
 0x6ab   :  { %2150 = vmatpush1.msra.mxu0 %v1998_v17  ;;  %v1978_v17 = vrot.slane %v1961_v59, %v3501_v34 }
 0x6ac   :  { %2151 = vmatprep.subr.mxu0 %v1995_v18 }
 0x6ad   :  { %2152 = vmatpush1.msra.mxu0 %v1994_v19  ;;  %v1985_v19 = vadd.f32 %v1974_v32, %v3574_v44 }
 0x6ae   :  { %2153 = vmatprep.subr.mxu0 %v1991_v20 }
 0x6af   :  { %2154 = vmatpush1.msra.mxu0 %v1990_v21  ;;  %v1986_v21 = vadd.f32 %v1978_v17, %v3576_v46  ;;  %v2321_v46 = vld [vmem:[#allocation10 + $0x110] sm:$0xff] }
 0x6b0   :  { %2188 = vmatmul.mubr.f32.vlgmr.msra.gmra.mxu0 %v3715_v47  ;;  %2988 = vmatprep.subr.mxu0 %v3319_v0  ;;  %v2223_v47 = vld [vmem:[#allocation9 + $0x100] sm:$0xff] }
 0x6b1   :  { %3020 = vmatprep.mubr.msk.f32.mxu0 %vm3320_vm0, %v3319_v0  ;;  %2984 = vmatpush3.msra.mxu1 %v2223_v47 }
 0x6b2   :  { %2989 = vmatpush3.msra.mxu0 %v2334_v6  ;;  %v2449_v6 = vld [vmem:[%s3794_s7 + $0x2] ss:$0 sm:$0xff] }
 0x6b3   :  { %2990 = vmatprep.subr.mxu0 %v3319_v0 }
 0x6b4   :  { %2991 = vmatpush3.msra.mxu0 %v2333_v53 }
 0x6b5   :  { %2992 = vmatprep.subr.mxu0 %v3319_v0 }
 0x6b6   :  { %2993 = vmatpush3.msra.mxu0 %v2332_v48 }
 0x6b7   :  { %2994 = vmatprep.subr.mxu0 %v3319_v0 }
 0x6b8   :  { %2995 = vmatpush3.msra.mxu0 %v2331_v49 }
 0x6b9   :  { %2996 = vmatprep.subr.mxu0 %v3319_v0 }
 0x6ba   :  { %2997 = vmatpush3.msra.mxu0 %v2330_v50 }
 0x6bb   :  { %2998 = vmatprep.subr.mxu0 %v3319_v0 }
 0x6bc   :  { %2999 = vmatpush3.msra.mxu0 %v2329_v51 }
 0x6bd   :  { %3000 = vmatprep.subr.mxu0 %v3319_v0 }
 0x6be   :  { %3001 = vmatpush3.msra.mxu0 %v2328_v52 }
 0x6bf   :  { %3002 = vmatprep.subr.mxu0 %v3319_v0 }
 0x6c0   :  { %3003 = vmatpush3.msra.mxu0 %v2327_v54 }
 0x6c1   :  { %3004 = vmatprep.subr.mxu0 %v3319_v0 }
 0x6c2   :  { %3005 = vmatpush3.msra.mxu0 %v2326_v56 }
 0x6c3   :  { %3006 = vmatprep.subr.mxu0 %v3319_v0 }
 0x6c4   :  { %3007 = vmatpush3.msra.mxu0 %v2325_v58 }
 0x6c5   :  { %3008 = vmatprep.subr.mxu0 %v3319_v0 }
 0x6c6   :  { %3009 = vmatpush3.msra.mxu0 %v2324_v62 }
 0x6c7   :  { %3010 = vmatprep.subr.mxu0 %v3319_v0 }
 0x6c8   :  { %3011 = vmatpush3.msra.mxu0 %v2323_v60 }
 0x6c9   :  { %3012 = vmatprep.subr.mxu0 %v3319_v0 }
 0x6ca   :  { %3013 = vmatpush3.msra.mxu0 %v2322_v2 }
 0x6cb   :  { %3014 = vmatprep.subr.mxu0 %v3319_v0 }
 0x6cc   :  { %3015 = vmatpush3.msra.mxu0 %v2321_v46 }
 0x6cd   :  { %3016 = vmatprep.subr.mxu0 %v3319_v0 }
 0x6ce   :  { %3017 = vmatpush3.msra.mxu0 %v2320_v36 }
 0x6cf   :  { %3018 = vmatprep.subr.mxu0 %v3319_v0 }
 0x6d0   :  { %3019 = vmatpush3.msra.mxu0 %v2319_v37 }
 0x730   :  { %v2118_v3 = vpop.f32.mrf.mxu1 }
 0x731   :  { %v2194_v16 = vadd.f32 %v2118_v3, %v1983_v14 }
 0x732   :  { %v2120_v5 = vpop.f32.mrf.mxu1 }
 0x733   :  { %v2195_v7 = vadd.f32 %v2120_v5, %v1984_v4  ;;  %v2443_v1 = vmul.f32 -1.442695, %v2194_v16 }
 0x735   :  { %v2444_v8 = vmul.f32 -1.442695, %v2195_v7 }
 0x737   :  { %3073 = vpow2.f32 %v2444_v8 }
 0x744   :  { %v3074_v9 = vpop.eup %3073 }
 0x745   :  { %v2205_v57 = vadd.f32 1.0, %v3074_v9 }
 0x747   :  { %3075 = vrcp.f32 %v2205_v57 }
 0x748   :  { %3077 = vpow2.f32 %v2443_v1 }
 0x750   :  { %v1954_v11 = vpop.f32.mrf.mxu0 }
 0x751   :  { %v1955_v43 = vadd.f32 %v2441_v25, %v1954_v11 }
 0x752   :  { %v2952_v12 = vpop.f32.mrf.mxu0 }
 0x753   :  { %2442 = vst [vmem:[%s3803_s16 + $0x8] sm:$0xff] %v1955_v43 }
 0x754   :  { %v3076_v13 = vpop.eup %3075 }
 0x755   :  { %v2217_v15 = vmul.f32 %v3076_v13, %v1766_v42  ;;  %v3078_v28 = vpop.eup %3077 }
 0x756   :  { %v2204_v18 = vadd.f32 1.0, %v3078_v28 }
 0x758   :  { %3079 = vrcp.f32 %v2204_v18 }
 0x765   :  { %v3080_v29 = vpop.eup %3079 }
 0x770   :  { %v2189_v20 = vpop.f32.mrf.mxu0 }
 0x771   :  { %v2196_v22 = vadd.f32 %v2189_v20, %v1985_v19 }
 0x772   :  { %v2191_v23 = vpop.f32.mrf.mxu0 }
 0x773   :  { %3081 = vtanh.f32 %v2196_v22  ;;  %v2197_v24 = vadd.f32 %v2191_v23, %v1986_v21 }
 0x775   :  { %v2445_v27 = vmul.f32 -1.442695, %v2197_v24 }
 0x777   :  { %3083 = vpow2.f32 %v2445_v27 }
 0x780   :  { %v3082_v30 = vpop.eup %3081 }
 0x781   :  { %v2218_v61 = vmul.f32 %v3082_v30, %v3080_v29 }
 0x783   :  { %v2219_v31 = vadd.f32 %v2218_v61, %v2217_v15 }
 0x784   :  { %v3084_v45 = vpop.eup %3083 }
 0x785   :  { %v2214_v33 = vadd.f32 1.0, %v3084_v45  ;;  %3085 = vtanh.f32 %v2219_v31 }
 0x787   :  { %3087 = vrcp.f32 %v2214_v33 }
 0x792   :  { %v3086_v34 = vpop.eup %3085 }
 0x794   :  { %v3088_v44 = vpop.eup %3087 }
 0x795   :  { %v2221_v35 = vmul.f32 %v3088_v44, %v3086_v34 }
 0x797   :  { %2986 = vmatmul.mubr.f32.vlgmr.msra.gmra.mxu1 %v2221_v35 }
 0x857   :  { %v2313_v39 = vpop.f32.mrf.mxu1 }
 0x858   :  { %v2314_v40 = vadd.f32 %v2447_v38, %v2313_v39 }
 0x859   :  { %v2987_v41 = vpop.f32.mrf.mxu1 }
 0x85a   :  { %v2317_v47 = vmax.f32 %v2314_v40, 0.0 }
 0x85c   :  { %3021 = vmatmul.mubr.f32.vlgmr.msra.gmra.mxu0 %v2317_v47 }
 0x91c   :  { %v2409_v53 = vpop.f32.mrf.mxu0 }
 0x91d   :  { %v2410_v48 = vadd.f32 %v2449_v6, %v2409_v53 }
 0x91e   :  { %v3022_v49 = vpop.f32.mrf.mxu0 }
 0x91f   :  { %2450 = vst [vmem:[%s3803_s16 + $0x10] sm:$0xff] %v2410_v48 }
 0x920   :  { %2419 = vsyncpa [#allocation3], 1 }
 0x921   :  { %2420 = vsyncpa [#allocation5], 1 }
 0x922   :  { %2421 = vsyncpa [#allocation8], 1 }
 0x923   :  { %2422 = vsyncpa [#allocation11], 1 }
 0x924   :  { %2423 = vsyncpa [#allocation14], 1 }
 0x925   :  { %2424 = vsyncpa [#allocation17], 1 }

</bundles_post_ra>
